<compile_context>
chip_gen: v6e
topology: v6e:2x2x1
jax: 0.10.0
libtpu: 0.0.40
codegen_flags: <defaults>
</compile_context>

<pallas_src>
import functools

import jax
import jax.numpy as jnp
from jax.experimental import pallas as pl
from jax.experimental.pallas import tpu as pltpu

EPS = 1e-5  # PyTorch nn.LayerNorm default


def _layernorm(x, g, b):
    # x: (rows, D) f32; g, b: (1, D) f32
    mu = jnp.mean(x, axis=-1, keepdims=True)
    var = jnp.mean(jnp.square(x - mu), axis=-1, keepdims=True)
    return (x - mu) * jax.lax.rsqrt(var + EPS) * g + b


# ----------------------------------------------------------------------------
# Fused transformer kernel: grid = (batch_blocks, n_layers)
#   * batch axis "parallel" (megacore sharding), layer axis "arbitrary"
#   * x block + residual carry stay resident across the layer axis
#   * per-layer weights indexed by the layer grid coordinate -> streamed
# ----------------------------------------------------------------------------
def encoder_kernel(x_ref, pos_ref, mask_ref,
                   ln1g_ref, ln1b_ref, wqkv_ref, bqkv_ref, wo_ref, bo_ref,
                   ln2g_ref, ln2b_ref, w1_ref, b1_ref, w2_ref, b2_ref,
                   o_ref, carry_ref, *, n_head):
    layer = pl.program_id(1)

    @pl.when(layer == 0)
    def _():
        # positional-embedding add fused into the first layer (no separate
        # elementwise pallas_call, no extra HBM round trip of the activations)
        carry_ref[...] = x_ref[...] + pos_ref[...]

    x = carry_ref[...]                       # (R, D) f32 residual stream
    R, D = x.shape
    L = mask_ref.shape[0]
    NB = R // L                              # sequences packed per grid step
    hd = D // n_head

    # ---------------- attention branch: x + attn(ln_1(x)) ----------------
    h = _layernorm(x, ln1g_ref[0], ln1b_ref[0]).astype(jnp.bfloat16)
    # single big (NB*L, D) @ (D, 3D) bf16 matmul, f32 accumulation on the MXU
    qkv = jnp.dot(h, wqkv_ref[0], preferred_element_type=jnp.float32) + bqkv_ref[0]

    mask = mask_ref[...]                     # (L, L) additive causal mask, f32
    wo = wo_ref[0]                           # (D, D) bf16

    # TODO(synk): a fully head-flattened (NB*nh)-batched attention needs a
    # D->(nh,hd) lane split + transpose; kept as per-head, NB-batched einsums
    # (flash-attention style 3-D dot_general) for robust Mosaic lowering.
    attn = jnp.zeros((R, D), jnp.float32)
    for hi in range(n_head):                 # static unroll over heads
        # (R, hd) -> (NB, L, hd): splits only the leading (sublane) dim
        qh = qkv[:, hi * hd:(hi + 1) * hd].reshape(NB, L, hd).astype(jnp.bfloat16)
        kh = qkv[:, D + hi * hd:D + (hi + 1) * hd].reshape(NB, L, hd).astype(jnp.bfloat16)
        vh = qkv[:, 2 * D + hi * hd:2 * D + (hi + 1) * hd].reshape(NB, L, hd).astype(jnp.bfloat16)
        # 1/sqrt(hd) is folded into the Q columns of wqkv/bqkv host-side.
        s = jnp.einsum("bqd,bkd->bqk", qh, kh,
                       preferred_element_type=jnp.float32) + mask
        m = jnp.max(s, axis=-1, keepdims=True)
        p = jnp.exp(s - m)
        p = p * pl.reciprocal(jnp.sum(p, axis=-1, keepdims=True), approx=True)
        oh = jnp.einsum("bqk,bkd->bqd", p.astype(jnp.bfloat16), vh,
                        preferred_element_type=jnp.float32)
        # out-projection decomposed per head: avoids concatenating head outputs
        attn = attn + jnp.dot(oh.reshape(R, hd).astype(jnp.bfloat16),
                              wo[hi * hd:(hi + 1) * hd, :],
                              preferred_element_type=jnp.float32)
    x = x + attn + bo_ref[0]

    # ---------------- MLP branch: x + mlp(ln_2(x)), QuickGELU ----------------
    h = _layernorm(x, ln2g_ref[0], ln2b_ref[0]).astype(jnp.bfloat16)
    t = jnp.dot(h, w1_ref[0], preferred_element_type=jnp.float32) + b1_ref[0]
    t = t * jax.nn.sigmoid(1.702 * t)        # QuickGELU in f32 (VPU/EUP)
    x = x + jnp.dot(t.astype(jnp.bfloat16), w2_ref[0],
                    preferred_element_type=jnp.float32) + b2_ref[0]

    carry_ref[...] = x

    @pl.when(layer == pl.num_programs(1) - 1)
    def _():
        o_ref[...] = x.astype(o_ref.dtype)


def run_transformer(x2d, pos_tiled, mask, stacked, *, n_head, batch_block, L):
    NR, D = x2d.shape
    n_layers = stacked["wqkv"].shape[0]
    F = stacked["w1"].shape[-1]
    nb_rows = batch_block * L
    grid = (NR // nb_rows, n_layers)

    def wspec(shape):
        # one layer's weight tile, streamed / double-buffered along layer axis
        return pl.BlockSpec((1,) + shape, lambda b, l: (l, 0, 0))

    return pl.pallas_call(
        functools.partial(encoder_kernel, n_head=n_head),
        out_shape=jax.ShapeDtypeStruct((NR, D), jnp.float32),
        grid=grid,
        in_specs=[
            pl.BlockSpec((nb_rows, D), lambda b, l: (b, 0)),   # x (read at l==0)
            pl.BlockSpec((nb_rows, D), lambda b, l: (0, 0)),   # pos (pre-tiled)
            pl.BlockSpec((L, L), lambda b, l: (0, 0)),         # causal mask
            wspec((1, D)), wspec((1, D)),                      # ln_1 g/b
            wspec((D, 3 * D)), wspec((1, 3 * D)),              # attn in_proj
            wspec((D, D)), wspec((1, D)),                      # attn out_proj
            wspec((1, D)), wspec((1, D)),                      # ln_2 g/b
            wspec((D, F)), wspec((1, F)),                      # mlp.c_fc
            wspec((F, D)), wspec((1, D)),                      # mlp.c_proj
        ],
        out_specs=pl.BlockSpec((nb_rows, D), lambda b, l: (b, 0)),
        scratch_shapes=[pltpu.VMEM((nb_rows, D), jnp.float32)],
        compiler_params=pltpu.CompilerParams(
            dimension_semantics=("parallel", "arbitrary"),
            # explicit scoped-VMEM budget: above v5e's 16 MiB default, below
            # v7x's 64 MiB physical (bf16 weights keep real CLIP sizes inside)
            vmem_limit_bytes=48 * 1024 * 1024,
        ),
    )(x2d, pos_tiled, mask,
      stacked["ln1_g"], stacked["ln1_b"], stacked["wqkv"], stacked["bqkv"],
      stacked["wo"], stacked["bo"], stacked["ln2_g"], stacked["ln2_b"],
      stacked["w1"], stacked["b1"], stacked["w2"], stacked["b2"])


# ----------------------------------------------------------------------------
# Final kernel: ln_final on the (already gathered) EOT rows + text_projection
# -> one lane-dense (N, D) @ (D, P) matmul instead of N one-row matmuls.
# ----------------------------------------------------------------------------
def final_kernel(x_ref, g_ref, b_ref, proj_ref, o_ref):
    h = _layernorm(x_ref[...], g_ref[...], b_ref[...])
    o_ref[...] = jnp.dot(h.astype(jnp.bfloat16), proj_ref[...],
                         preferred_element_type=jnp.float32).astype(o_ref.dtype)


def ln_project(x_eot, ln_g, ln_b, proj_bf16):
    N, D = x_eot.shape
    P = proj_bf16.shape[1]
    return pl.pallas_call(
        final_kernel,
        out_shape=jax.ShapeDtypeStruct((N, P), jnp.float32),
        grid=(1,),
        in_specs=[
            pl.BlockSpec((N, D), lambda i: (0, 0)),
            pl.BlockSpec((1, D), lambda i: (0, 0)),
            pl.BlockSpec((1, D), lambda i: (0, 0)),
            pl.BlockSpec((D, P), lambda i: (0, 0)),
        ],
        out_specs=pl.BlockSpec((N, P), lambda i: (0, 0)),
        compiler_params=pltpu.CompilerParams(dimension_semantics=("arbitrary",)),
    )(x_eot, ln_g, ln_b, proj_bf16)


# ----------------------------------------------------------------------------
# Parameter preparation: stack per-layer weights along a leading layer axis,
# fold the attention scale into Q, cast weight matrices to bf16 (halves DMA
# and VMEM; biases / LN params stay f32 and are added post-accumulation).
# ----------------------------------------------------------------------------
def _prepare_stacked(params):
    layers = params["layers"]
    D = layers[0]["wqkv"].shape[0]
    hd = D // params["n_head"]
    scale = hd ** -0.5

    def stack(name):
        return jnp.stack([p[name] for p in layers], axis=0)

    wqkv = stack("wqkv")
    bqkv = stack("bqkv")
    wqkv = wqkv.at[:, :, :D].multiply(scale)   # fold 1/sqrt(hd) into Q weights
    bqkv = bqkv.at[:, :, :D].multiply(scale)   # ... and Q bias

    return dict(
        ln1_g=stack("ln1_g"), ln1_b=stack("ln1_b"),
        wqkv=wqkv.astype(jnp.bfloat16), bqkv=bqkv,
        wo=stack("wo").astype(jnp.bfloat16), bo=stack("bo"),
        ln2_g=stack("ln2_g"), ln2_b=stack("ln2_b"),
        w1=stack("w1").astype(jnp.bfloat16), b1=stack("b1"),
        w2=stack("w2").astype(jnp.bfloat16), b2=stack("b2"),
    )


# ----------------------------------------------------------------------------
# Full forward (Pallas) and pure-JAX f32 reference
# ----------------------------------------------------------------------------
def text_encoder_prompt(prompts, tokenized_prompts, params, *, batch_block=None):
    N, L, D = prompts.shape
    n_head = params["n_head"]
    if batch_block is None:
        batch_block = next(nb for nb in (8, 4, 2, 1) if N % nb == 0)
    assert N % batch_block == 0

    stacked = _prepare_stacked(params)
    pos_tiled = jnp.tile(params["pos"], (batch_block, 1)).astype(jnp.float32)
    mask = jnp.where(jnp.arange(L)[None, :] > jnp.arange(L)[:, None],
                     -jnp.inf, 0.0).astype(jnp.float32)

    x2d = prompts.reshape(N * L, D).astype(jnp.float32)
    x_out = run_transformer(x2d, pos_tiled, mask, stacked,
                            n_head=n_head, batch_block=batch_block, L=L)

    # EOT-token gather in plain JAX glue, then one small Pallas LN+proj matmul
    eot = jnp.argmax(tokenized_prompts, axis=-1)
    x_eot = x_out.reshape(N, L, D)[jnp.arange(N), eot]
    return ln_project(x_eot, params["lnf_g"], params["lnf_b"],
                      params["proj"].astype(jnp.bfloat16))


def text_encoder_prompt_ref(prompts, tokenized_prompts, params):
    x = prompts + params["pos"]
    N, L, D = x.shape
    nh = params["n_head"]
    hd = D // nh
    mask = jnp.where(jnp.arange(L)[None, :] > jnp.arange(L)[:, None], -jnp.inf, 0.0)
    for p in params["layers"]:
        h = _layernorm(x, p["ln1_g"], p["ln1_b"])
        qkv = h @ p["wqkv"] + p["bqkv"]
        q, k, v = jnp.split(qkv, 3, axis=-1)
        q = q.reshape(N, L, nh, hd).transpose(0, 2, 1, 3) * (hd ** -0.5)
        k = k.reshape(N, L, nh, hd).transpose(0, 2, 1, 3)
        v = v.reshape(N, L, nh, hd).transpose(0, 2, 1, 3)
        s = jnp.einsum("bhqd,bhkd->bhqk", q, k) + mask
        a = jax.nn.softmax(s, axis=-1)
        o = jnp.einsum("bhqk,bhkd->bhqd", a, v).transpose(0, 2, 1, 3).reshape(N, L, D)
        x = x + o @ p["wo"] + p["bo"]
        h = _layernorm(x, p["ln2_g"], p["ln2_b"])
        h = h @ p["w1"] + p["b1"]
        h = h * jax.nn.sigmoid(1.702 * h)
        x = x + h @ p["w2"] + p["b2"]
    x = _layernorm(x, params["lnf_g"], params["lnf_b"])
    eot = jnp.argmax(tokenized_prompts, axis=-1)
    return x[jnp.arange(N), eot] @ params["proj"]


# ----------------------------------------------------------------------------
# Deterministic synthetic parameters
# ----------------------------------------------------------------------------
def init_params(key, *, n_layers, L, D, n_head, P, mlp_ratio=4):
    F = mlp_ratio * D
    keys = iter(jax.random.split(key, 8 * n_layers + 4))

    def w(shape, std=0.02):
        return jax.random.normal(next(keys), shape, jnp.float32) * std

    layers = []
    for _ in range(n_layers):
        layers.append(dict(
            ln1_g=jnp.ones((1, D), jnp.float32), ln1_b=jnp.zeros((1, D), jnp.float32),
            wqkv=w((D, 3 * D)), bqkv=w((1, 3 * D), 0.01),
            wo=w((D, D)), bo=w((1, D), 0.01),
            ln2_g=jnp.ones((1, D), jnp.float32), ln2_b=jnp.zeros((1, D), jnp.float32),
            w1=w((D, F)), b1=w((1, F), 0.01),
            w2=w((F, D)), b2=w((1, D), 0.01),
        ))
    return dict(
        pos=w((L, D), 0.01),
        layers=layers,
        lnf_g=jnp.ones((1, D), jnp.float32),
        lnf_b=jnp.zeros((1, D), jnp.float32),
        proj=w((D, P), D ** -0.5),
        n_head=n_head,
    )


if __name__ == "__main__":
    N, L, D, n_head, n_layers, P = 8, 8, 32, 4, 2, 16

    key = jax.random.PRNGKey(0)
    k_params, k_prompts, k_tok = jax.random.split(key, 3)

    params = init_params(k_params, n_layers=n_layers, L=L, D=D, n_head=n_head, P=P)
    prompts = jax.random.normal(k_prompts, (N, L, D), jnp.float32)
    tokenized_prompts = jax.random.randint(k_tok, (N, L), 0, 1000, jnp.int32)

    # batch_block=4 -> batch grid of length 2 (exercises per-block carry reset
    # and gives both v7x TensorCores work on the "parallel" axis)
    out = text_encoder_prompt(prompts, tokenized_prompts, params, batch_block=4)
    out = jax.block_until_ready(out)

    ref = text_encoder_prompt_ref(prompts, tokenized_prompts, params)
    assert out.shape == (N, P), out.shape
    max_err = float(jnp.max(jnp.abs(out - ref)))
    # bf16 matmul inputs (mirroring the module's eval .half() path) vs f32 ref
    assert jnp.allclose(out, ref, atol=3e-2, rtol=3e-2), max_err

    print("KERNEL_OK")
</pallas_src>

<mosaic_0001>
module attributes {stable_mosaic.version = 11 : i64} {
  func.func @encoder_kernel(%arg0: i32, %arg1: i32, %arg2: memref<32x32xf32, #tpu.memory_space<vmem>>, %arg3: memref<32x32xf32, #tpu.memory_space<vmem>>, %arg4: memref<8x8xf32, #tpu.memory_space<vmem>>, %arg5: memref<1x1x32xf32, #tpu.memory_space<vmem>>, %arg6: memref<1x1x32xf32, #tpu.memory_space<vmem>>, %arg7: memref<1x32x96xbf16, #tpu.memory_space<vmem>>, %arg8: memref<1x1x96xf32, #tpu.memory_space<vmem>>, %arg9: memref<1x32x32xbf16, #tpu.memory_space<vmem>>, %arg10: memref<1x1x32xf32, #tpu.memory_space<vmem>>, %arg11: memref<1x1x32xf32, #tpu.memory_space<vmem>>, %arg12: memref<1x1x32xf32, #tpu.memory_space<vmem>>, %arg13: memref<1x32x128xbf16, #tpu.memory_space<vmem>>, %arg14: memref<1x1x128xf32, #tpu.memory_space<vmem>>, %arg15: memref<1x128x32xbf16, #tpu.memory_space<vmem>>, %arg16: memref<1x1x32xf32, #tpu.memory_space<vmem>>, %arg17: memref<32x32xf32, #tpu.memory_space<vmem>>, %arg18: memref<32x32xf32, #tpu.memory_space<vmem>>) attributes {dimension_semantics = [#tpu.dimension_semantics<parallel>, #tpu.dimension_semantics<arbitrary>], iteration_bounds = array<i64: 2, 2>, scalar_prefetch = 0 : i64, scratch_operands = 1 : i64, tpu.core_type = #tpu.core_type<tc>, window_params = [{transform_indices = @transform_0, window_bounds = array<i64: 32, 32>}, {pipeline_mode = #tpu.pipeline_mode<synchronous>, transform_indices = @transform_1, window_bounds = array<i64: 32, 32>}, {pipeline_mode = #tpu.pipeline_mode<synchronous>, transform_indices = @transform_2, window_bounds = array<i64: 8, 8>}, {transform_indices = @transform_3, window_bounds = array<i64: 1, 1, 32>}, {transform_indices = @transform_4, window_bounds = array<i64: 1, 1, 32>}, {transform_indices = @transform_5, window_bounds = array<i64: 1, 32, 96>}, {transform_indices = @transform_6, window_bounds = array<i64: 1, 1, 96>}, {transform_indices = @transform_7, window_bounds = array<i64: 1, 32, 32>}, {transform_indices = @transform_8, window_bounds = array<i64: 1, 1, 32>}, {transform_indices = @transform_9, window_bounds = array<i64: 1, 1, 32>}, {transform_indices = @transform_10, window_bounds = array<i64: 1, 1, 32>}, {transform_indices = @transform_11, window_bounds = array<i64: 1, 32, 128>}, {transform_indices = @transform_12, window_bounds = array<i64: 1, 1, 128>}, {transform_indices = @transform_13, window_bounds = array<i64: 1, 128, 32>}, {transform_indices = @transform_14, window_bounds = array<i64: 1, 1, 32>}, {transform_indices = @transform_15, window_bounds = array<i64: 32, 32>}]} {
    %c0_i32 = arith.constant 0 : i32
    %0 = arith.cmpi eq, %arg1, %c0_i32 : i32
    %1 = arith.extui %0 : i1 to i32
    %c0_i32_0 = arith.constant 0 : i32
    %2 = arith.cmpi ne, %1, %c0_i32_0 : i32
    scf.if %2 {
      %c0_78 = arith.constant 0 : index
      %c0_79 = arith.constant 0 : index
      %222 = vector.load %arg2[%c0_78, %c0_79] : memref<32x32xf32, #tpu.memory_space<vmem>>, vector<32x32xf32>
      %c0_80 = arith.constant 0 : index
      %c0_81 = arith.constant 0 : index
      %223 = vector.load %arg3[%c0_80, %c0_81] : memref<32x32xf32, #tpu.memory_space<vmem>>, vector<32x32xf32>
      %224 = arith.addf %222, %223 : vector<32x32xf32>
      %c0_82 = arith.constant 0 : index
      %c0_83 = arith.constant 0 : index
      %225 = vector.load %arg18[%c0_82, %c0_83] : memref<32x32xf32, #tpu.memory_space<vmem>>, vector<32x32xf32>
      tpu.vector_store %arg18[%c0_82, %c0_83], %224 {strides = array<i32>} : memref<32x32xf32, #tpu.memory_space<vmem>>, vector<32x32xf32>,
    } else {
    }
    %c0 = arith.constant 0 : index
    %c0_1 = arith.constant 0 : index
    %3 = vector.load %arg18[%c0, %c0_1] : memref<32x32xf32, #tpu.memory_space<vmem>>, vector<32x32xf32>
    %c0_2 = arith.constant 0 : index
    %c0_3 = arith.constant 0 : index
    %c0_4 = arith.constant 0 : index
    %4 = vector.load %arg5[%c0_2, %c0_3, %c0_4] : memref<1x1x32xf32, #tpu.memory_space<vmem>>, vector<1x1x32xf32>
    %5 = vector.shape_cast %4 : vector<1x1x32xf32> to vector<1x32xf32>
    %c0_5 = arith.constant 0 : index
    %c0_6 = arith.constant 0 : index
    %c0_7 = arith.constant 0 : index
    %6 = vector.load %arg6[%c0_5, %c0_6, %c0_7] : memref<1x1x32xf32, #tpu.memory_space<vmem>>, vector<1x1x32xf32>
    %7 = vector.shape_cast %6 : vector<1x1x32xf32> to vector<1x32xf32>
    %cst = arith.constant dense<0.000000e+00> : vector<32xf32>
    %8 = vector.multi_reduction <add>, %3, %cst [1] : vector<32x32xf32> to vector<32xf32>
    %9 = vector.shape_cast %8 : vector<32xf32> to vector<32x1xf32>
    %cst_8 = arith.constant 3.200000e+01 : f32
    %10 = vector.broadcast %cst_8 : f32 to vector<32x1xf32>
    %11 = arith.divf %9, %10 : vector<32x1xf32>
    %12 = vector.broadcast %11 : vector<32x1xf32> to vector<32x32xf32>
    %13 = arith.subf %3, %12 : vector<32x32xf32>
    %14 = arith.mulf %13, %13 : vector<32x32xf32>
    %cst_9 = arith.constant dense<0.000000e+00> : vector<32xf32>
    %15 = vector.multi_reduction <add>, %14, %cst_9 [1] : vector<32x32xf32> to vector<32xf32>
    %16 = vector.shape_cast %15 : vector<32xf32> to vector<32x1xf32>
    %cst_10 = arith.constant 3.200000e+01 : f32
    %17 = vector.broadcast %cst_10 : f32 to vector<32x1xf32>
    %18 = arith.divf %16, %17 : vector<32x1xf32>
    %19 = vector.broadcast %11 : vector<32x1xf32> to vector<32x32xf32>
    %20 = arith.subf %3, %19 : vector<32x32xf32>
    %cst_11 = arith.constant 9.99999974E-6 : f32
    %21 = vector.broadcast %cst_11 : f32 to vector<32x1xf32>
    %22 = arith.addf %18, %21 : vector<32x1xf32>
    %23 = math.rsqrt %22 : vector<32x1xf32>
    %24 = vector.broadcast %23 : vector<32x1xf32> to vector<32x32xf32>
    %25 = arith.mulf %20, %24 : vector<32x32xf32>
    %26 = vector.broadcast %5 : vector<1x32xf32> to vector<32x32xf32>
    %27 = arith.mulf %25, %26 : vector<32x32xf32>
    %28 = vector.broadcast %7 : vector<1x32xf32> to vector<32x32xf32>
    %29 = arith.addf %27, %28 : vector<32x32xf32>
    %30 = arith.truncf %29 : vector<32x32xf32> to vector<32x32xbf16>
    %c0_12 = arith.constant 0 : index
    %c0_13 = arith.constant 0 : index
    %c0_14 = arith.constant 0 : index
    %31 = vector.load %arg7[%c0_12, %c0_13, %c0_14] : memref<1x32x96xbf16, #tpu.memory_space<vmem>>, vector<1x32x96xbf16>
    %32 = vector.shape_cast %31 : vector<1x32x96xbf16> to vector<32x96xbf16>
    %cst_15 = arith.constant dense<0.000000e+00> : vector<32x96xf32>
    %33 = tpu.matmul %30, %32, %cst_15 {dimension_numbers = #tpu.dot_dimension_numbers<[1], [0], [0], [1], [0, 0, 1, 1], [], []>} : vector<32x32xbf16>, vector<32x96xbf16>, vector<32x96xf32> -> vector<32x96xf32>
    %c0_16 = arith.constant 0 : index
    %c0_17 = arith.constant 0 : index
    %c0_18 = arith.constant 0 : index
    %34 = vector.load %arg8[%c0_16, %c0_17, %c0_18] : memref<1x1x96xf32, #tpu.memory_space<vmem>>, vector<1x1x96xf32>
    %35 = vector.shape_cast %34 : vector<1x1x96xf32> to vector<1x96xf32>
    %36 = vector.broadcast %35 : vector<1x96xf32> to vector<32x96xf32>
    %37 = arith.addf %33, %36 : vector<32x96xf32>
    %c0_19 = arith.constant 0 : index
    %c0_20 = arith.constant 0 : index
    %38 = vector.load %arg4[%c0_19, %c0_20] : memref<8x8xf32, #tpu.memory_space<vmem>>, vector<8x8xf32>
    %c0_21 = arith.constant 0 : index
    %c0_22 = arith.constant 0 : index
    %c0_23 = arith.constant 0 : index
    %39 = vector.load %arg9[%c0_21, %c0_22, %c0_23] : memref<1x32x32xbf16, #tpu.memory_space<vmem>>, vector<1x32x32xbf16>
    %40 = vector.shape_cast %39 : vector<1x32x32xbf16> to vector<32x32xbf16>
    %cst_24 = arith.constant 0.000000e+00 : f32
    %41 = vector.broadcast %cst_24 : f32 to vector<32x32xf32>
    %42 = vector.extract_strided_slice %37 {offsets = [0, 0], sizes = [32, 8], strides = [1, 1]} : vector<32x96xf32> to vector<32x8xf32>
    %43 = vector.shape_cast %42 : vector<32x8xf32> to vector<4x8x8xf32>
    %44 = arith.truncf %43 : vector<4x8x8xf32> to vector<4x8x8xbf16>
    %45 = vector.extract_strided_slice %37 {offsets = [0, 32], sizes = [32, 8], strides = [1, 1]} : vector<32x96xf32> to vector<32x8xf32>
    %46 = vector.shape_cast %45 : vector<32x8xf32> to vector<4x8x8xf32>
    %47 = arith.truncf %46 : vector<4x8x8xf32> to vector<4x8x8xbf16>
    %48 = vector.extract_strided_slice %37 {offsets = [0, 64], sizes = [32, 8], strides = [1, 1]} : vector<32x96xf32> to vector<32x8xf32>
    %49 = vector.shape_cast %48 : vector<32x8xf32> to vector<4x8x8xf32>
    %50 = arith.truncf %49 : vector<4x8x8xf32> to vector<4x8x8xbf16>
    "tpu.trace_start"() <{level = 10 : i32, message = "bqd,bkd->bqk"}> : () -> ()
    %cst_25 = arith.constant dense<0.000000e+00> : vector<4x8x8xf32>
    %51 = tpu.matmul %44, %47, %cst_25 {dimension_numbers = #tpu.dot_dimension_numbers<[2], [2], [1], [1], [0, 0, 0, 1, 1, 1], [0], [0]>} : vector<4x8x8xbf16>, vector<4x8x8xbf16>, vector<4x8x8xf32> -> vector<4x8x8xf32>
    "tpu.trace_stop"() : () -> ()
    %52 = vector.shape_cast %38 : vector<8x8xf32> to vector<1x8x8xf32>
    %53 = vector.broadcast %52 : vector<1x8x8xf32> to vector<4x8x8xf32>
    %54 = arith.addf %51, %53 : vector<4x8x8xf32>
    %cst_26 = arith.constant dense<0xFF800000> : vector<4x8xf32>
    %55 = vector.multi_reduction <maximumf>, %54, %cst_26 [2] : vector<4x8x8xf32> to vector<4x8xf32>
    %56 = vector.shape_cast %55 : vector<4x8xf32> to vector<4x8x1xf32>
    %57 = vector.broadcast %56 : vector<4x8x1xf32> to vector<4x8x8xf32>
    %58 = arith.subf %54, %57 : vector<4x8x8xf32>
    %59 = math.exp %58 : vector<4x8x8xf32>
    %cst_27 = arith.constant dense<0.000000e+00> : vector<4x8xf32>
    %60 = vector.multi_reduction <add>, %59, %cst_27 [2] : vector<4x8x8xf32> to vector<4x8xf32>
    %61 = vector.shape_cast %60 : vector<4x8xf32> to vector<4x8x1xf32>
    %62 = tpu.reciprocal %61 {approx = true} : vector<4x8x1xf32> -> vector<4x8x1xf32>
    %63 = vector.broadcast %62 : vector<4x8x1xf32> to vector<4x8x8xf32>
    %64 = arith.mulf %59, %63 : vector<4x8x8xf32>
    %65 = arith.truncf %64 : vector<4x8x8xf32> to vector<4x8x8xbf16>
    "tpu.trace_start"() <{level = 10 : i32, message = "bqk,bkd->bqd"}> : () -> ()
    %cst_28 = arith.constant dense<0.000000e+00> : vector<4x8x8xf32>
    %66 = tpu.matmul %65, %50, %cst_28 {dimension_numbers = #tpu.dot_dimension_numbers<[2], [1], [1], [2], [0, 0, 0, 1, 1, 2], [0], [0]>} : vector<4x8x8xbf16>, vector<4x8x8xbf16>, vector<4x8x8xf32> -> vector<4x8x8xf32>
    "tpu.trace_stop"() : () -> ()
    %67 = vector.shape_cast %66 : vector<4x8x8xf32> to vector<32x8xf32>
    %68 = arith.truncf %67 : vector<32x8xf32> to vector<32x8xbf16>
    %69 = vector.extract_strided_slice %40 {offsets = [0, 0], sizes = [8, 32], strides = [1, 1]} : vector<32x32xbf16> to vector<8x32xbf16>
    %cst_29 = arith.constant dense<0.000000e+00> : vector<32x32xf32>
    %70 = tpu.matmul %68, %69, %cst_29 {dimension_numbers = #tpu.dot_dimension_numbers<[1], [0], [0], [1], [0, 0, 1, 1], [], []>} : vector<32x8xbf16>, vector<8x32xbf16>, vector<32x32xf32> -> vector<32x32xf32>
    %71 = arith.addf %41, %70 : vector<32x32xf32>
    %72 = vector.extract_strided_slice %37 {offsets = [0, 8], sizes = [32, 8], strides = [1, 1]} : vector<32x96xf32> to vector<32x8xf32>
    %73 = vector.shape_cast %72 : vector<32x8xf32> to vector<4x8x8xf32>
    %74 = arith.truncf %73 : vector<4x8x8xf32> to vector<4x8x8xbf16>
    %75 = vector.extract_strided_slice %37 {offsets = [0, 40], sizes = [32, 8], strides = [1, 1]} : vector<32x96xf32> to vector<32x8xf32>
    %76 = vector.shape_cast %75 : vector<32x8xf32> to vector<4x8x8xf32>
    %77 = arith.truncf %76 : vector<4x8x8xf32> to vector<4x8x8xbf16>
    %78 = vector.extract_strided_slice %37 {offsets = [0, 72], sizes = [32, 8], strides = [1, 1]} : vector<32x96xf32> to vector<32x8xf32>
    %79 = vector.shape_cast %78 : vector<32x8xf32> to vector<4x8x8xf32>
    %80 = arith.truncf %79 : vector<4x8x8xf32> to vector<4x8x8xbf16>
    "tpu.trace_start"() <{level = 10 : i32, message = "bqd,bkd->bqk"}> : () -> ()
    %cst_30 = arith.constant dense<0.000000e+00> : vector<4x8x8xf32>
    %81 = tpu.matmul %74, %77, %cst_30 {dimension_numbers = #tpu.dot_dimension_numbers<[2], [2], [1], [1], [0, 0, 0, 1, 1, 1], [0], [0]>} : vector<4x8x8xbf16>, vector<4x8x8xbf16>, vector<4x8x8xf32> -> vector<4x8x8xf32>
    "tpu.trace_stop"() : () -> ()
    %82 = vector.shape_cast %38 : vector<8x8xf32> to vector<1x8x8xf32>
    %83 = vector.broadcast %82 : vector<1x8x8xf32> to vector<4x8x8xf32>
    %84 = arith.addf %81, %83 : vector<4x8x8xf32>
    %cst_31 = arith.constant dense<0xFF800000> : vector<4x8xf32>
    %85 = vector.multi_reduction <maximumf>, %84, %cst_31 [2] : vector<4x8x8xf32> to vector<4x8xf32>
    %86 = vector.shape_cast %85 : vector<4x8xf32> to vector<4x8x1xf32>
    %87 = vector.broadcast %86 : vector<4x8x1xf32> to vector<4x8x8xf32>
    %88 = arith.subf %84, %87 : vector<4x8x8xf32>
    %89 = math.exp %88 : vector<4x8x8xf32>
    %cst_32 = arith.constant dense<0.000000e+00> : vector<4x8xf32>
    %90 = vector.multi_reduction <add>, %89, %cst_32 [2] : vector<4x8x8xf32> to vector<4x8xf32>
    %91 = vector.shape_cast %90 : vector<4x8xf32> to vector<4x8x1xf32>
    %92 = tpu.reciprocal %91 {approx = true} : vector<4x8x1xf32> -> vector<4x8x1xf32>
    %93 = vector.broadcast %92 : vector<4x8x1xf32> to vector<4x8x8xf32>
    %94 = arith.mulf %89, %93 : vector<4x8x8xf32>
    %95 = arith.truncf %94 : vector<4x8x8xf32> to vector<4x8x8xbf16>
    "tpu.trace_start"() <{level = 10 : i32, message = "bqk,bkd->bqd"}> : () -> ()
    %cst_33 = arith.constant dense<0.000000e+00> : vector<4x8x8xf32>
    %96 = tpu.matmul %95, %80, %cst_33 {dimension_numbers = #tpu.dot_dimension_numbers<[2], [1], [1], [2], [0, 0, 0, 1, 1, 2], [0], [0]>} : vector<4x8x8xbf16>, vector<4x8x8xbf16>, vector<4x8x8xf32> -> vector<4x8x8xf32>
    "tpu.trace_stop"() : () -> ()
    %97 = vector.shape_cast %96 : vector<4x8x8xf32> to vector<32x8xf32>
    %98 = arith.truncf %97 : vector<32x8xf32> to vector<32x8xbf16>
    %99 = vector.extract_strided_slice %40 {offsets = [8, 0], sizes = [8, 32], strides = [1, 1]} : vector<32x32xbf16> to vector<8x32xbf16>
    %cst_34 = arith.constant dense<0.000000e+00> : vector<32x32xf32>
    %100 = tpu.matmul %98, %99, %cst_34 {dimension_numbers = #tpu.dot_dimension_numbers<[1], [0], [0], [1], [0, 0, 1, 1], [], []>} : vector<32x8xbf16>, vector<8x32xbf16>, vector<32x32xf32> -> vector<32x32xf32>
    %101 = arith.addf %71, %100 : vector<32x32xf32>
    %102 = vector.extract_strided_slice %37 {offsets = [0, 16], sizes = [32, 8], strides = [1, 1]} : vector<32x96xf32> to vector<32x8xf32>
    %103 = vector.shape_cast %102 : vector<32x8xf32> to vector<4x8x8xf32>
    %104 = arith.truncf %103 : vector<4x8x8xf32> to vector<4x8x8xbf16>
    %105 = vector.extract_strided_slice %37 {offsets = [0, 48], sizes = [32, 8], strides = [1, 1]} : vector<32x96xf32> to vector<32x8xf32>
    %106 = vector.shape_cast %105 : vector<32x8xf32> to vector<4x8x8xf32>
    %107 = arith.truncf %106 : vector<4x8x8xf32> to vector<4x8x8xbf16>
    %108 = vector.extract_strided_slice %37 {offsets = [0, 80], sizes = [32, 8], strides = [1, 1]} : vector<32x96xf32> to vector<32x8xf32>
    %109 = vector.shape_cast %108 : vector<32x8xf32> to vector<4x8x8xf32>
    %110 = arith.truncf %109 : vector<4x8x8xf32> to vector<4x8x8xbf16>
    "tpu.trace_start"() <{level = 10 : i32, message = "bqd,bkd->bqk"}> : () -> ()
    %cst_35 = arith.constant dense<0.000000e+00> : vector<4x8x8xf32>
    %111 = tpu.matmul %104, %107, %cst_35 {dimension_numbers = #tpu.dot_dimension_numbers<[2], [2], [1], [1], [0, 0, 0, 1, 1, 1], [0], [0]>} : vector<4x8x8xbf16>, vector<4x8x8xbf16>, vector<4x8x8xf32> -> vector<4x8x8xf32>
    "tpu.trace_stop"() : () -> ()
    %112 = vector.shape_cast %38 : vector<8x8xf32> to vector<1x8x8xf32>
    %113 = vector.broadcast %112 : vector<1x8x8xf32> to vector<4x8x8xf32>
    %114 = arith.addf %111, %113 : vector<4x8x8xf32>
    %cst_36 = arith.constant dense<0xFF800000> : vector<4x8xf32>
    %115 = vector.multi_reduction <maximumf>, %114, %cst_36 [2] : vector<4x8x8xf32> to vector<4x8xf32>
    %116 = vector.shape_cast %115 : vector<4x8xf32> to vector<4x8x1xf32>
    %117 = vector.broadcast %116 : vector<4x8x1xf32> to vector<4x8x8xf32>
    %118 = arith.subf %114, %117 : vector<4x8x8xf32>
    %119 = math.exp %118 : vector<4x8x8xf32>
    %cst_37 = arith.constant dense<0.000000e+00> : vector<4x8xf32>
    %120 = vector.multi_reduction <add>, %119, %cst_37 [2] : vector<4x8x8xf32> to vector<4x8xf32>
    %121 = vector.shape_cast %120 : vector<4x8xf32> to vector<4x8x1xf32>
    %122 = tpu.reciprocal %121 {approx = true} : vector<4x8x1xf32> -> vector<4x8x1xf32>
    %123 = vector.broadcast %122 : vector<4x8x1xf32> to vector<4x8x8xf32>
    %124 = arith.mulf %119, %123 : vector<4x8x8xf32>
    %125 = arith.truncf %124 : vector<4x8x8xf32> to vector<4x8x8xbf16>
    "tpu.trace_start"() <{level = 10 : i32, message = "bqk,bkd->bqd"}> : () -> ()
    %cst_38 = arith.constant dense<0.000000e+00> : vector<4x8x8xf32>
    %126 = tpu.matmul %125, %110, %cst_38 {dimension_numbers = #tpu.dot_dimension_numbers<[2], [1], [1], [2], [0, 0, 0, 1, 1, 2], [0], [0]>} : vector<4x8x8xbf16>, vector<4x8x8xbf16>, vector<4x8x8xf32> -> vector<4x8x8xf32>
    "tpu.trace_stop"() : () -> ()
    %127 = vector.shape_cast %126 : vector<4x8x8xf32> to vector<32x8xf32>
    %128 = arith.truncf %127 : vector<32x8xf32> to vector<32x8xbf16>
    %129 = vector.extract_strided_slice %40 {offsets = [16, 0], sizes = [8, 32], strides = [1, 1]} : vector<32x32xbf16> to vector<8x32xbf16>
    %cst_39 = arith.constant dense<0.000000e+00> : vector<32x32xf32>
    %130 = tpu.matmul %128, %129, %cst_39 {dimension_numbers = #tpu.dot_dimension_numbers<[1], [0], [0], [1], [0, 0, 1, 1], [], []>} : vector<32x8xbf16>, vector<8x32xbf16>, vector<32x32xf32> -> vector<32x32xf32>
    %131 = arith.addf %101, %130 : vector<32x32xf32>
    %132 = vector.extract_strided_slice %37 {offsets = [0, 24], sizes = [32, 8], strides = [1, 1]} : vector<32x96xf32> to vector<32x8xf32>
    %133 = vector.shape_cast %132 : vector<32x8xf32> to vector<4x8x8xf32>
    %134 = arith.truncf %133 : vector<4x8x8xf32> to vector<4x8x8xbf16>
    %135 = vector.extract_strided_slice %37 {offsets = [0, 56], sizes = [32, 8], strides = [1, 1]} : vector<32x96xf32> to vector<32x8xf32>
    %136 = vector.shape_cast %135 : vector<32x8xf32> to vector<4x8x8xf32>
    %137 = arith.truncf %136 : vector<4x8x8xf32> to vector<4x8x8xbf16>
    %138 = vector.extract_strided_slice %37 {offsets = [0, 88], sizes = [32, 8], strides = [1, 1]} : vector<32x96xf32> to vector<32x8xf32>
    %139 = vector.shape_cast %138 : vector<32x8xf32> to vector<4x8x8xf32>
    %140 = arith.truncf %139 : vector<4x8x8xf32> to vector<4x8x8xbf16>
    "tpu.trace_start"() <{level = 10 : i32, message = "bqd,bkd->bqk"}> : () -> ()
    %cst_40 = arith.constant dense<0.000000e+00> : vector<4x8x8xf32>
    %141 = tpu.matmul %134, %137, %cst_40 {dimension_numbers = #tpu.dot_dimension_numbers<[2], [2], [1], [1], [0, 0, 0, 1, 1, 1], [0], [0]>} : vector<4x8x8xbf16>, vector<4x8x8xbf16>, vector<4x8x8xf32> -> vector<4x8x8xf32>
    "tpu.trace_stop"() : () -> ()
    %142 = vector.shape_cast %38 : vector<8x8xf32> to vector<1x8x8xf32>
    %143 = vector.broadcast %142 : vector<1x8x8xf32> to vector<4x8x8xf32>
    %144 = arith.addf %141, %143 : vector<4x8x8xf32>
    %cst_41 = arith.constant dense<0xFF800000> : vector<4x8xf32>
    %145 = vector.multi_reduction <maximumf>, %144, %cst_41 [2] : vector<4x8x8xf32> to vector<4x8xf32>
    %146 = vector.shape_cast %145 : vector<4x8xf32> to vector<4x8x1xf32>
    %147 = vector.broadcast %146 : vector<4x8x1xf32> to vector<4x8x8xf32>
    %148 = arith.subf %144, %147 : vector<4x8x8xf32>
    %149 = math.exp %148 : vector<4x8x8xf32>
    %cst_42 = arith.constant dense<0.000000e+00> : vector<4x8xf32>
    %150 = vector.multi_reduction <add>, %149, %cst_42 [2] : vector<4x8x8xf32> to vector<4x8xf32>
    %151 = vector.shape_cast %150 : vector<4x8xf32> to vector<4x8x1xf32>
    %152 = tpu.reciprocal %151 {approx = true} : vector<4x8x1xf32> -> vector<4x8x1xf32>
    %153 = vector.broadcast %152 : vector<4x8x1xf32> to vector<4x8x8xf32>
    %154 = arith.mulf %149, %153 : vector<4x8x8xf32>
    %155 = arith.truncf %154 : vector<4x8x8xf32> to vector<4x8x8xbf16>
    "tpu.trace_start"() <{level = 10 : i32, message = "bqk,bkd->bqd"}> : () -> ()
    %cst_43 = arith.constant dense<0.000000e+00> : vector<4x8x8xf32>
    %156 = tpu.matmul %155, %140, %cst_43 {dimension_numbers = #tpu.dot_dimension_numbers<[2], [1], [1], [2], [0, 0, 0, 1, 1, 2], [0], [0]>} : vector<4x8x8xbf16>, vector<4x8x8xbf16>, vector<4x8x8xf32> -> vector<4x8x8xf32>
    "tpu.trace_stop"() : () -> ()
    %157 = vector.shape_cast %156 : vector<4x8x8xf32> to vector<32x8xf32>
    %158 = arith.truncf %157 : vector<32x8xf32> to vector<32x8xbf16>
    %159 = vector.extract_strided_slice %40 {offsets = [24, 0], sizes = [8, 32], strides = [1, 1]} : vector<32x32xbf16> to vector<8x32xbf16>
    %cst_44 = arith.constant dense<0.000000e+00> : vector<32x32xf32>
    %160 = tpu.matmul %158, %159, %cst_44 {dimension_numbers = #tpu.dot_dimension_numbers<[1], [0], [0], [1], [0, 0, 1, 1], [], []>} : vector<32x8xbf16>, vector<8x32xbf16>, vector<32x32xf32> -> vector<32x32xf32>
    %161 = arith.addf %131, %160 : vector<32x32xf32>
    %162 = arith.addf %3, %161 : vector<32x32xf32>
    %c0_45 = arith.constant 0 : index
    %c0_46 = arith.constant 0 : index
    %c0_47 = arith.constant 0 : index
    %163 = vector.load %arg10[%c0_45, %c0_46, %c0_47] : memref<1x1x32xf32, #tpu.memory_space<vmem>>, vector<1x1x32xf32>
    %164 = vector.shape_cast %163 : vector<1x1x32xf32> to vector<1x32xf32>
    %165 = vector.broadcast %164 : vector<1x32xf32> to vector<32x32xf32>
    %166 = arith.addf %162, %165 : vector<32x32xf32>
    %c0_48 = arith.constant 0 : index
    %c0_49 = arith.constant 0 : index
    %c0_50 = arith.constant 0 : index
    %167 = vector.load %arg11[%c0_48, %c0_49, %c0_50] : memref<1x1x32xf32, #tpu.memory_space<vmem>>, vector<1x1x32xf32>
    %168 = vector.shape_cast %167 : vector<1x1x32xf32> to vector<1x32xf32>
    %c0_51 = arith.constant 0 : index
    %c0_52 = arith.constant 0 : index
    %c0_53 = arith.constant 0 : index
    %169 = vector.load %arg12[%c0_51, %c0_52, %c0_53] : memref<1x1x32xf32, #tpu.memory_space<vmem>>, vector<1x1x32xf32>
    %170 = vector.shape_cast %169 : vector<1x1x32xf32> to vector<1x32xf32>
    %cst_54 = arith.constant dense<0.000000e+00> : vector<32xf32>
    %171 = vector.multi_reduction <add>, %166, %cst_54 [1] : vector<32x32xf32> to vector<32xf32>
    %172 = vector.shape_cast %171 : vector<32xf32> to vector<32x1xf32>
    %cst_55 = arith.constant 3.200000e+01 : f32
    %173 = vector.broadcast %cst_55 : f32 to vector<32x1xf32>
    %174 = arith.divf %172, %173 : vector<32x1xf32>
    %175 = vector.broadcast %174 : vector<32x1xf32> to vector<32x32xf32>
    %176 = arith.subf %166, %175 : vector<32x32xf32>
    %177 = arith.mulf %176, %176 : vector<32x32xf32>
    %cst_56 = arith.constant dense<0.000000e+00> : vector<32xf32>
    %178 = vector.multi_reduction <add>, %177, %cst_56 [1] : vector<32x32xf32> to vector<32xf32>
    %179 = vector.shape_cast %178 : vector<32xf32> to vector<32x1xf32>
    %cst_57 = arith.constant 3.200000e+01 : f32
    %180 = vector.broadcast %cst_57 : f32 to vector<32x1xf32>
    %181 = arith.divf %179, %180 : vector<32x1xf32>
    %182 = vector.broadcast %174 : vector<32x1xf32> to vector<32x32xf32>
    %183 = arith.subf %166, %182 : vector<32x32xf32>
    %cst_58 = arith.constant 9.99999974E-6 : f32
    %184 = vector.broadcast %cst_58 : f32 to vector<32x1xf32>
    %185 = arith.addf %181, %184 : vector<32x1xf32>
    %186 = math.rsqrt %185 : vector<32x1xf32>
    %187 = vector.broadcast %186 : vector<32x1xf32> to vector<32x32xf32>
    %188 = arith.mulf %183, %187 : vector<32x32xf32>
    %189 = vector.broadcast %168 : vector<1x32xf32> to vector<32x32xf32>
    %190 = arith.mulf %188, %189 : vector<32x32xf32>
    %191 = vector.broadcast %170 : vector<1x32xf32> to vector<32x32xf32>
    %192 = arith.addf %190, %191 : vector<32x32xf32>
    %193 = arith.truncf %192 : vector<32x32xf32> to vector<32x32xbf16>
    %c0_59 = arith.constant 0 : index
    %c0_60 = arith.constant 0 : index
    %c0_61 = arith.constant 0 : index
    %194 = vector.load %arg13[%c0_59, %c0_60, %c0_61] : memref<1x32x128xbf16, #tpu.memory_space<vmem>>, vector<1x32x128xbf16>
    %195 = vector.shape_cast %194 : vector<1x32x128xbf16> to vector<32x128xbf16>
    %cst_62 = arith.constant dense<0.000000e+00> : vector<32x128xf32>
    %196 = tpu.matmul %193, %195, %cst_62 {dimension_numbers = #tpu.dot_dimension_numbers<[1], [0], [0], [1], [0, 0, 1, 1], [], []>} : vector<32x32xbf16>, vector<32x128xbf16>, vector<32x128xf32> -> vector<32x128xf32>
    %c0_63 = arith.constant 0 : index
    %c0_64 = arith.constant 0 : index
    %c0_65 = arith.constant 0 : index
    %197 = vector.load %arg14[%c0_63, %c0_64, %c0_65] : memref<1x1x128xf32, #tpu.memory_space<vmem>>, vector<1x1x128xf32>
    %198 = vector.shape_cast %197 : vector<1x1x128xf32> to vector<1x128xf32>
    %199 = vector.broadcast %198 : vector<1x128xf32> to vector<32x128xf32>
    %200 = arith.addf %196, %199 : vector<32x128xf32>
    %cst_66 = arith.constant 1.702000e+00 : f32
    %201 = vector.broadcast %cst_66 : f32 to vector<32x128xf32>
    %202 = arith.mulf %201, %200 : vector<32x128xf32>
    %203 = arith.negf %202 : vector<32x128xf32>
    %204 = math.exp %203 : vector<32x128xf32>
    %cst_67 = arith.constant 1.000000e+00 : f32
    %205 = vector.broadcast %cst_67 : f32 to vector<32x128xf32>
    %206 = arith.addf %205, %204 : vector<32x128xf32>
    %207 = arith.divf %205, %206 : vector<32x128xf32>
    %208 = arith.mulf %200, %207 : vector<32x128xf32>
    %209 = arith.truncf %208 : vector<32x128xf32> to vector<32x128xbf16>
    %c0_68 = arith.constant 0 : index
    %c0_69 = arith.constant 0 : index
    %c0_70 = arith.constant 0 : index
    %210 = vector.load %arg15[%c0_68, %c0_69, %c0_70] : memref<1x128x32xbf16, #tpu.memory_space<vmem>>, vector<1x128x32xbf16>
    %211 = vector.shape_cast %210 : vector<1x128x32xbf16> to vector<128x32xbf16>
    %cst_71 = arith.constant dense<0.000000e+00> : vector<32x32xf32>
    %212 = tpu.matmul %209, %211, %cst_71 {dimension_numbers = #tpu.dot_dimension_numbers<[1], [0], [0], [1], [0, 0, 1, 1], [], []>} : vector<32x128xbf16>, vector<128x32xbf16>, vector<32x32xf32> -> vector<32x32xf32>
    %213 = arith.addf %166, %212 : vector<32x32xf32>
    %c0_72 = arith.constant 0 : index
    %c0_73 = arith.constant 0 : index
    %c0_74 = arith.constant 0 : index
    %214 = vector.load %arg16[%c0_72, %c0_73, %c0_74] : memref<1x1x32xf32, #tpu.memory_space<vmem>>, vector<1x1x32xf32>
    %215 = vector.shape_cast %214 : vector<1x1x32xf32> to vector<1x32xf32>
    %216 = vector.broadcast %215 : vector<1x32xf32> to vector<32x32xf32>
    %217 = arith.addf %213, %216 : vector<32x32xf32>
    %c0_75 = arith.constant 0 : index
    %c0_76 = arith.constant 0 : index
    %218 = vector.load %arg18[%c0_75, %c0_76] : memref<32x32xf32, #tpu.memory_space<vmem>>, vector<32x32xf32>
    tpu.vector_store %arg18[%c0_75, %c0_76], %217 {strides = array<i32>} : memref<32x32xf32, #tpu.memory_space<vmem>>, vector<32x32xf32>,
    %c1_i32 = arith.constant 1 : i32
    %219 = arith.cmpi eq, %arg1, %c1_i32 : i32
    %220 = arith.extui %219 : i1 to i32
    %c0_i32_77 = arith.constant 0 : i32
    %221 = arith.cmpi ne, %220, %c0_i32_77 : i32
    scf.if %221 {
      %c0_78 = arith.constant 0 : index
      %c0_79 = arith.constant 0 : index
      %222 = vector.load %arg17[%c0_78, %c0_79] : memref<32x32xf32, #tpu.memory_space<vmem>>, vector<32x32xf32>
      tpu.vector_store %arg17[%c0_78, %c0_79], %217 {strides = array<i32>} : memref<32x32xf32, #tpu.memory_space<vmem>>, vector<32x32xf32>,
    } else {
    }
    return
  }
  func.func @transform_0(%arg0: i32, %arg1: i32) -> (i32, i32) {
    %c0_i32 = arith.constant 0 : i32
    %c0_i32_0 = arith.constant 0 : i32
    return %arg0, %c0_i32 : i32, i32
  }
  func.func @transform_1(%arg0: i32, %arg1: i32) -> (i32, i32) {
    %c0_i32 = arith.constant 0 : i32
    %c0_i32_0 = arith.constant 0 : i32
    %c0_i32_1 = arith.constant 0 : i32
    return %c0_i32, %c0_i32_0 : i32, i32
  }
  func.func @transform_2(%arg0: i32, %arg1: i32) -> (i32, i32) {
    %c0_i32 = arith.constant 0 : i32
    %c0_i32_0 = arith.constant 0 : i32
    %c0_i32_1 = arith.constant 0 : i32
    return %c0_i32, %c0_i32_0 : i32, i32
  }
  func.func @transform_3(%arg0: i32, %arg1: i32) -> (i32, i32, i32) {
    %c0_i32 = arith.constant 0 : i32
    %c0_i32_0 = arith.constant 0 : i32
    %c0_i32_1 = arith.constant 0 : i32
    return %arg1, %c0_i32, %c0_i32_0 : i32, i32, i32
  }
  func.func @transform_4(%arg0: i32, %arg1: i32) -> (i32, i32, i32) {
    %c0_i32 = arith.constant 0 : i32
    %c0_i32_0 = arith.constant 0 : i32
    %c0_i32_1 = arith.constant 0 : i32
    return %arg1, %c0_i32, %c0_i32_0 : i32, i32, i32
  }
  func.func @transform_5(%arg0: i32, %arg1: i32) -> (i32, i32, i32) {
    %c0_i32 = arith.constant 0 : i32
    %c0_i32_0 = arith.constant 0 : i32
    %c0_i32_1 = arith.constant 0 : i32
    return %arg1, %c0_i32, %c0_i32_0 : i32, i32, i32
  }
  func.func @transform_6(%arg0: i32, %arg1: i32) -> (i32, i32, i32) {
    %c0_i32 = arith.constant 0 : i32
    %c0_i32_0 = arith.constant 0 : i32
    %c0_i32_1 = arith.constant 0 : i32
    return %arg1, %c0_i32, %c0_i32_0 : i32, i32, i32
  }
  func.func @transform_7(%arg0: i32, %arg1: i32) -> (i32, i32, i32) {
    %c0_i32 = arith.constant 0 : i32
    %c0_i32_0 = arith.constant 0 : i32
    %c0_i32_1 = arith.constant 0 : i32
    return %arg1, %c0_i32, %c0_i32_0 : i32, i32, i32
  }
  func.func @transform_8(%arg0: i32, %arg1: i32) -> (i32, i32, i32) {
    %c0_i32 = arith.constant 0 : i32
    %c0_i32_0 = arith.constant 0 : i32
    %c0_i32_1 = arith.constant 0 : i32
    return %arg1, %c0_i32, %c0_i32_0 : i32, i32, i32
  }
  func.func @transform_9(%arg0: i32, %arg1: i32) -> (i32, i32, i32) {
    %c0_i32 = arith.constant 0 : i32
    %c0_i32_0 = arith.constant 0 : i32
    %c0_i32_1 = arith.constant 0 : i32
    return %arg1, %c0_i32, %c0_i32_0 : i32, i32, i32
  }
  func.func @transform_10(%arg0: i32, %arg1: i32) -> (i32, i32, i32) {
    %c0_i32 = arith.constant 0 : i32
    %c0_i32_0 = arith.constant 0 : i32
    %c0_i32_1 = arith.constant 0 : i32
    return %arg1, %c0_i32, %c0_i32_0 : i32, i32, i32
  }
  func.func @transform_11(%arg0: i32, %arg1: i32) -> (i32, i32, i32) {
    %c0_i32 = arith.constant 0 : i32
    %c0_i32_0 = arith.constant 0 : i32
    %c0_i32_1 = arith.constant 0 : i32
    return %arg1, %c0_i32, %c0_i32_0 : i32, i32, i32
  }
  func.func @transform_12(%arg0: i32, %arg1: i32) -> (i32, i32, i32) {
    %c0_i32 = arith.constant 0 : i32
    %c0_i32_0 = arith.constant 0 : i32
    %c0_i32_1 = arith.constant 0 : i32
    return %arg1, %c0_i32, %c0_i32_0 : i32, i32, i32
  }
  func.func @transform_13(%arg0: i32, %arg1: i32) -> (i32, i32, i32) {
    %c0_i32 = arith.constant 0 : i32
    %c0_i32_0 = arith.constant 0 : i32
    %c0_i32_1 = arith.constant 0 : i32
    return %arg1, %c0_i32, %c0_i32_0 : i32, i32, i32
  }
  func.func @transform_14(%arg0: i32, %arg1: i32) -> (i32, i32, i32) {
    %c0_i32 = arith.constant 0 : i32
    %c0_i32_0 = arith.constant 0 : i32
    %c0_i32_1 = arith.constant 0 : i32
    return %arg1, %c0_i32, %c0_i32_0 : i32, i32, i32
  }
  func.func @transform_15(%arg0: i32, %arg1: i32) -> (i32, i32) {
    %c0_i32 = arith.constant 0 : i32
    %c0_i32_0 = arith.constant 0 : i32
    return %arg0, %c0_i32 : i32, i32
  }
}

</mosaic_0001>

<bundles_post_ra>
// kernel: tpu_custom_call.1
= control target key start
LH: loop header
LB: loop body
LE: loop exit
PB: predicated region body
PF: predicated region fallthrough
CT: control target
= control target key end

     0   :  { %s4172_s18 = smov 0   ;;  %s4174_s19 = smov 0   ;;  %s4758_s0 = inlined_call_operand.vmem [shape: f32[64,32], index: 0, kind: input, shape index: {}]   ;;  %s4759_s1 = inlined_call_operand.vmem [shape: f32[32,32], index: 1, kind: input, shape index: {}]   ;;  %s4760_s2 = inlined_call_operand.vmem [shape: f32[8,8], index: 2, kind: input, shape index: {}]   ;;  %s4761_s3 = inlined_call_operand.vmem [shape: f32[2,1,32], index: 3, kind: input, shape index: {}]   ;;  %s4762_s4 = inlined_call_operand.vmem [shape: f32[2,1,32], index: 4, kind: input, shape index: {}]   ;;  %s4763_s5 = inlined_call_operand.vmem [shape: bf16[2,32,96], index: 5, kind: input, shape index: {}]   ;;  %s4764_s6 = inlined_call_operand.vmem [shape: f32[2,1,96], index: 6, kind: input, shape index: {}]   ;;  %s4765_s7 = inlined_call_operand.vmem [shape: bf16[2,32,32], index: 7, kind: input, shape index: {}]   ;;  %s4766_s8 = inlined_call_operand.vmem [shape: f32[2,1,32], index: 8, kind: input, shape index: {}]   ;;  %s4767_s9 = inlined_call_operand.vmem [shape: f32[2,1,32], index: 9, kind: input, shape index: {}]   ;;  %s4768_s10 = inlined_call_operand.vmem [shape: f32[2,1,32], index: 10, kind: input, shape index: {}]   ;;  %s4769_s11 = inlined_call_operand.vmem [shape: bf16[2,32,128], index: 11, kind: input, shape index: {}]   ;;  %s4770_s12 = inlined_call_operand.vmem [shape: f32[2,1,128], index: 12, kind: input, shape index: {}]   ;;  %s4771_s13 = inlined_call_operand.vmem [shape: bf16[2,128,32], index: 13, kind: input, shape index: {}]   ;;  %s4772_s14 = inlined_call_operand.vmem [shape: f32[2,1,32], index: 14, kind: input, shape index: {}]   ;;  %s4773_s15 = inlined_call_operand.vmem [shape: f32[64,32], index: 15, kind: output, shape index: {}]  }
   0x1   :  { %4780 = sst [smem:[#allocation9_spill]] %s4758_s0  ;;  %s4176_s20 = smov 0  }
   0x2   :  { %4781 = sst [smem:[#allocation10_spill]] %s4759_s1  ;;  %s4178_s21 = smov 0  }
   0x3   :  { %4782 = sst [smem:[#allocation11_spill]] %s4760_s2  ;;  %s4180_s22 = smov 0  }
   0x4   :  { %4783 = sst [smem:[#allocation12_spill]] %s4762_s4 }
   0x5   :  { %4784 = sst [smem:[#allocation13_spill]] %s4763_s5 }
   0x6   :  { %4785 = sst [smem:[#allocation14_spill]] %s4765_s7 }
   0x7   :  { %4786 = sst [smem:[#allocation15_spill]] %s4773_s15 }
   0x8 LB: > { %4787 = sst [smem:[#allocation3_spill]] %s4061_s18  ;;  %s34_s23 = sadd.s32 1, %s4069_s20  ;;  %s4077_s22 = sphi %s4180_s22, %s25_s22   ;;  %s4073_s21 = sphi %s4178_s21, %s4814_s21   ;;  %s4069_s20 = sphi %s4176_s20, %s4813_s20   ;;  %s4065_s19 = sphi %s4174_s19, %s4812_s19   ;;  %s4061_s18 = sphi %s4172_s18, %s4811_s18  }
   0x9   : > { %4788 = sst [smem:[#allocation4_spill]] %s4069_s20  ;;  %s37_s24 = sadd.s32 1, %s4073_s21 }
   0xa   : > { %4789 = sst [smem:[#allocation5_spill]] %s4073_s21  ;;  %p35_p0 = scmp.ge.s32.totalorder %s34_s23, 2 }
   0xb   : > { %4790 = sst [smem:[#allocation6_spill]] %s4077_s22  ;;  %p3434_p1 = scmp.ge.s32.totalorder %s4077_s22, 1 }
   0xc   : > { %p554_p2 = scmp.lt.s32.totalorder %s4077_s22, 5  ;;  %s4816_s23 = smov (%p35_p0, %s34_s23), 0 }
   0xd   : > { %4791 = sst [smem:[#allocation7_spill]] %s4816_s23  ;;  %s4818_s24 = smov (!%p35_p0, %s37_s24), %s4073_s21 }
   0xe   : > { %p555_p3 = pnand %p3434_p1, %p554_p2  ;;  %p39_p4 = scmp.ge.s32.totalorder %s4818_s24, 2 }
   0xf   : > { %s3435_s25 = sshll.u32 (!%p555_p3), %s4065_s19, 2  ;;  %p652_p5 = scmp.lt.s32.totalorder (!%p555_p3), %s4061_s18, 1 }
  0x10   : > { %s4820_s24 = smov (%p39_p4, %s4818_s24), 0  ;;  %558 = sbr.rel (%p555_p3) target bundleno = 4413 (0x113d), region = 80 }
  0x11   : > { %4792 = sst [smem:[#allocation8_spill]] %s4820_s24  ;;  %p647_p6 = scmp.lt.s32.totalorder (!%p555_p3), %s3435_s25, 7 }
  0x12   : > { %s4794_s0 = sld [smem:[#allocation9_spill]] (!%p555_p3) }
  0x13   : > { %s4795_s5 = sld [smem:[#allocation13_spill]] (!%p555_p3) }
  0x14   : > { %s4796_s7 = sld [smem:[#allocation14_spill]] (!%p555_p3) }
  0x15   : > { %s4206_s26 = scalar_select %p652_p5, %s4061_s18, 1 }
  0x16   : > { %s4822_s25 = smov (!%p647_p6, %s3435_s25), 7 }
  0x17   : > { %s3436_s19 = sshll.u32 %s4822_s25, 3  ;;  %s3519_s24 = sshll.u32 %s4206_s26, 4 }
  0x18   : > { %s650_s20 = scalar_lea.vmem %s4794_s0, %s3436_s19  ;;  %s4249_s18 = scalar_lea.vmem %s4769_s11, %s3519_s24 }
  0x19   : > { %s4223_s1 = scalar_lea.vmem %s4795_s5, %s3519_s24  ;;  %s687_s27 = scalar_lea.vmem %s4770_s12, %s4206_s26 }
  0x1a   : > { %s4232_s30 = scalar_lea.vmem %s4796_s7, %s3519_s24  ;;  %s3522_s7 = sshll.u32 %s4206_s26, 6 }
  0x1b   : > { %s4259_s17 = scalar_lea.vmem %s4771_s13, %s3522_s7  ;;  %s695_s2 = scalar_lea.vmem %s4772_s14, %s4206_s26 }
  0x1c   : > { %s4797_s0 = sld [smem:[#allocation15_spill]] }
  0x1d   : > { %s4798_s24 = sld [smem:[#allocation3_spill]] }
  0x22   : > { %s4268_s4 = scalar_lea.vmem %s4797_s0, %s3436_s19 }
  0x23   : > { %p3447_p7 = scmp.ne.s32.totalorder %s4798_s24, 0 }
  0x24   : > { %s4799_s28 = sld [smem:[#allocation10_spill]] (!%p3447_p7) }
  0x25   : > { %706 = sbr.rel (%p3447_p7) target bundleno = 49 (0x31), region = 84 }
  0x2a   : > { %v707_v0 = vld [vmem:[%s650_s20] sm:$0xff]  ;;  %vm719_vm0 = vcmask 261120   ;;  %v708_v2 = vld [vmem:[%s650_s20 + $0x8] sm:$0xff]  ;;  %v709_v5 = vld [vmem:[%s650_s20 + $0x10] sm:$0xff] }
  0x2b   : > { %v711_v1 = vld [vmem:[%s4799_s28] sm:$0xff]  ;;  %v712_v4 = vld [vmem:[%s4799_s28 + $0x8] sm:$0xff]  ;;  %v713_v6 = vld [vmem:[%s4799_s28 + $0x10] sm:$0xff] }
  0x2c   : > { %v715_v3 = vadd.f32 %v711_v1, %v707_v0  ;;  %v716_v7 = vadd.f32 %v712_v4, %v708_v2  ;;  %v717_v8 = vadd.f32 %v713_v6, %v709_v5  ;;  %v710_v9 = vld [vmem:[%s650_s20 + $0x18] sm:$0xff] }
  0x2d   : > { %v714_v10 = vld [vmem:[%s4799_s28 + $0x18] sm:$0xff] }
  0x2e   : > { %720 = vst.msk [vmem:[#allocation2] sm:$0xff] %vm719_vm0, %v715_v3  ;;  %v718_v11 = vadd.f32 %v714_v10, %v710_v9  ;;  %721 = vst.msk [vmem:[#allocation2 + $0x8] sm:$0xff] %vm719_vm0, %v716_v7 }
  0x2f   : > { %722 = vst.msk [vmem:[#allocation2 + $0x10] sm:$0xff] %vm719_vm0, %v717_v8 }
  0x30   : > { %723 = vst.msk [vmem:[#allocation2 + $0x18] sm:$0xff] %vm719_vm0, %v718_v11 }
  0x31 PF: > { %vm730_vm1 = vcmask 261120   ;;  %v3926_v40 = vld [vmem:[%s4223_s1 + $0x8] sm:$0xff]   ;;  %v3927_v41 = vld [vmem:[%s4223_s1] sm:$0xff]   ;;  %s4800_s21 = scalar_lea.vmem %s4761_s3, %s4206_s26  ;;  %s4801_s24 = sld [smem:[#allocation12_spill]]  ;;  %v4079_v10 = vmov 0.0   ;;  %vm4080_vm2 = vmmov 0  }
  0x32   : > { %3617 = vmatprep.subr.bf16.mxu1 %v3926_v40  ;;  %v3448_v56 = vld [vmem:[%s4800_s21] ss:$0 sm:$0xff]  ;;  %3643 = vmatprep.subr.bf16.mxu0 %v4079_v10  ;;  %s4803_s25 = scalar_lea.vmem %s4764_s6, %s4206_s26  ;;  %s4081_s16 = smov 96   ;;  %vm896_vm3 = vcmask 64512   ;;  %vm1143_vm4 = vcmask 1043456  }
  0x33   : > { %3618 = vmatpush3.bf16.msra.mxu1 %v3926_v40  ;;  %3645 = vmatprep.mubr.msk.bf16.mxu0 %vm4080_vm2, %v4079_v10  ;;  %s4804_s19 = sld [smem:[#allocation11_spill]]  ;;  %s4082_s20 = smov 64  }
  0x34   : > { %3619 = vmatprep.subr.bf16.mxu1 %v3927_v41  ;;  %s4083_s21 = smov 88   ;;  %s4084_s23 = smov 120  }
  0x35   : > { %v724_v12 = vld [vmem:[#allocation2] sm:$0xff]  ;;  %v725_v14 = vld [vmem:[#allocation2 + $0x8] sm:$0xff]  ;;  %s4085_s22 = smov 56   ;;  %s4088_s29 = smov 48  }
  0x36   : > { %v726_v13 = vld [vmem:[#allocation2 + $0x10] sm:$0xff]  ;;  %v731_v15 = vsel %vm730_vm1, %v724_v12, 0.0  ;;  %v734_v18 = vsel %vm730_vm1, %v725_v14, 0.0  ;;  %s4089_s7 = smov 72   ;;  %s4091_s0 = smov 40  }
  0x37   : > { %v737_v16 = vsel %vm730_vm1, %v726_v13, 0.0  ;;  %v727_v17 = vld [vmem:[#allocation2 + $0x18] sm:$0xff]  ;;  %732 = vadd.xlane.f32.xlu0 %v731_v15  ;;  %3620 = vmatpush3.bf16.msra.mxu1 %v3927_v41  ;;  %s4802_s15 = scalar_lea.vmem %s4801_s24, %s4206_s26  ;;  %s4086_s24 = smov 80  }
  0x38   : > { %738 = vadd.xlane.f32.xlu1 %v737_v16  ;;  %v740_v19 = vsel %vm730_vm1, %v727_v17, 0.0  ;;  %v3449_v61 = vld [vmem:[%s4802_s15] ss:$0 sm:$0xff]  ;;  %3625 = vmatprep.subr.bf16.mxu1 %v4079_v10  ;;  %s4087_s15 = smov 112  }
  0x39   : > { %s4805_s1 = smov %s4804_s19 }
  0x3b   : > { %735 = vadd.xlane.f32.xlu0 %v734_v18 }
  0x3c   : > { %741 = vadd.xlane.f32.xlu1 %v740_v19 }
  0xc0   : > { %v733_v20 = vpop.xlane.xlu0 %732 }
  0xc1   : > { %v739_v21 = vpop.xlane.xlu1 %738  ;;  %v744_v22 = vmul.f32 0.03125, %v733_v20 }
  0xc2   : > { %v746_v23 = vmul.f32 0.03125, %v739_v21 }
  0xc3   : > { %v748_v24 = vsub.f32 %v724_v12, %v744_v22  ;;  %v3450_v12 = vld [vmem:[%s4803_s25] ss:$0 sm:$0xff]  ;;  %s4090_s25 = smov 104  }
  0xc4   : > { %v750_v25 = vsub.f32 %v726_v13, %v746_v23  ;;  %v736_v26 = vpop.xlane.xlu0 %735 }
  0xc5   : > { %v742_v27 = vpop.xlane.xlu1 %741  ;;  %v745_v28 = vmul.f32 0.03125, %v736_v26  ;;  %v752_v30 = vmul.f32 %v748_v24, %v748_v24 }
  0xc6   : > { %v747_v29 = vmul.f32 0.03125, %v742_v27  ;;  %v754_v31 = vmul.f32 %v750_v25, %v750_v25 }
  0xc7   : > { %v749_v32 = vsub.f32 %v725_v14, %v745_v28  ;;  %v756_v34 = vsel %vm730_vm1, %v752_v30, 0.0 }
  0xc8   : > { %v751_v33 = vsub.f32 %v727_v17, %v747_v29  ;;  %757 = vadd.xlane.f32.xlu0 %v756_v34  ;;  %v762_v35 = vsel %vm730_vm1, %v754_v31, 0.0 }
  0xc9   : > { %v753_v36 = vmul.f32 %v749_v32, %v749_v32 }
  0xca   : > { %v755_v37 = vmul.f32 %v751_v33, %v751_v33 }
  0xcb   : > { %v759_v38 = vsel %vm730_vm1, %v753_v36, 0.0 }
  0xcc   : > { %763 = vadd.xlane.f32.xlu0 %v762_v35  ;;  %760 = vadd.xlane.f32.xlu1 %v759_v38  ;;  %v765_v39 = vsel %vm730_vm1, %v755_v37, 0.0 }
  0xd0   : > { %766 = vadd.xlane.f32.xlu1 %v765_v39 }
 0x151   : > { %v758_v42 = vpop.xlane.xlu0 %757 }
 0x152   : > { %v768_v43 = vmul.f32 0.03125, %v758_v42 }
 0x154   : > { %v772_v44 = vadd.f32 1e-05, %v768_v43 }
 0x155   : > { %v761_v45 = vpop.xlane.xlu1 %760  ;;  %v764_v46 = vpop.xlane.xlu0 %763 }
 0x156   : > { %3938 = vrsqrt.f32 %v772_v44  ;;  %v769_v47 = vmul.f32 0.03125, %v761_v45  ;;  %v770_v48 = vmul.f32 0.03125, %v764_v46 }
 0x158   : > { %v773_v49 = vadd.f32 1e-05, %v769_v47  ;;  %v774_v50 = vadd.f32 1e-05, %v770_v48 }
 0x159   : > { %v767_v51 = vpop.xlane.xlu1 %766 }
 0x15a   : > { %3940 = vrsqrt.f32 %v773_v49  ;;  %v771_v52 = vmul.f32 0.03125, %v767_v51 }
 0x15b   : > { %3942 = vrsqrt.f32 %v774_v50 }
 0x15c   : > { %v775_v53 = vadd.f32 1e-05, %v771_v52 }
 0x15e   : > { %3944 = vrsqrt.f32 %v775_v53 }
 0x163   : > { %v3939_v54 = vpop.eup %3938 }
 0x164   : > { %v780_v55 = vmul.f32 %v3939_v54, %v748_v24 }
 0x166   : > { %v790_v60 = vmul.f32 %v3448_v56, %v780_v55 }
 0x167   : > { %v3941_v57 = vpop.eup %3940 }
 0x168   : > { %v3943_v58 = vpop.eup %3942  ;;  %v781_v59 = vmul.f32 %v3941_v57, %v749_v32  ;;  %v800_v1 = vadd.f32 %v3449_v61, %v790_v60  ;;  %v4355_v32 = vld [vmem:[%s4804_s19] sm:$0xff] }
 0x169   : > { %v782_v62 = vmul.f32 %v3943_v58, %v750_v25 }
 0x16a   : > { %v791_v63 = vmul.f32 %v3448_v56, %v781_v59 }
 0x16b   : > { %v3945_v0 = vpop.eup %3944  ;;  %v792_v4 = vmul.f32 %v3448_v56, %v782_v62 }
 0x16c   : > { %v801_v2 = vadd.f32 %v3449_v61, %v791_v63  ;;  %v783_v3 = vmul.f32 %v3945_v0, %v751_v33 }
 0x16d   : > { %v802_v7 = vadd.f32 %v3449_v61, %v792_v4 }
 0x16e   : > { %v804_v5 = vpack.c.bf16 %v801_v2, %v800_v1  ;;  %v793_v6 = vmul.f32 %v3448_v56, %v783_v3 }
 0x170   : > { %3621 = vmatprep.mubr.msk.bf16.mxu1 %vm730_vm1, %v804_v5  ;;  %v803_v8 = vadd.f32 %v3449_v61, %v793_v6 }
 0x172   : > { %v805_v9 = vpack.c.bf16 %v803_v8, %v802_v7 }
 0x174   : > { %3622 = vmatmul.mubr.msk.bf16.vlgmr.msra.gmra.mxu1 %vm730_vm1, %v805_v9 }
 0x175   : > { %3627 = vmatprep.mubr.msk.bf16.mxu1 %vm4080_vm2, %v4079_v10 }
 0x234   : > { %v3623_v11 = vpop.f32.mrf.mxu1 }
 0x235   : > { %v878_v19 = vadd.f32 %v3623_v11, %v3450_v12 }
 0x236   : > { %v869_v13 = vpop.f32.mrf.mxu1 }
 0x237   : > { %v870_v14 = vadd.f32 %v3450_v12, %v869_v13  ;;  %v4322_v21 = vpack.c.bf16 %v878_v19, %v878_v19 }
 0x238   : > { %v3624_v15 = vpop.f32.mrf.mxu1 }
 0x239   : > { %v4316_v16 = vpack.c.bf16 %v870_v14, %v870_v14  ;;  %v881_v22 = vadd.f32 %v3624_v15, %v3450_v12 }
 0x23a   : > { %v872_v17 = vpop.f32.mrf.mxu1 }
 0x23b   : > { %v873_v18 = vadd.f32 %v3450_v12, %v872_v17  ;;  %894 = vrot.lane.b32.xlu0 %v4316_v16, %s4081_s16  ;;  %v4325_v23 = vpack.c.bf16 %v881_v22, %v881_v22 }
 0x23d   : > { %v4319_v20 = vpack.c.bf16 %v873_v18, %v873_v18 }
 0x23f   : > { %944 = vrot.lane.b32.xlu1 %v4319_v20, %s4081_s16 }
 0x243   : > { %993 = vrot.lane.b32.xlu1 %v4322_v21, %s4081_s16 }
 0x247   : > { %1042 = vrot.lane.b32.xlu1 %v4325_v23, %s4081_s16 }
 0x2ad   : > { %v895_v24 = vpop.permute.xlu0 %894 }
 0x2ae   : > { %v901_v25 = vsel %vm896_vm3, %v895_v24, 0 }
 0x2af   : > { %3626 = vmatpush3.bf16.xpose.msra.mxu1 %v901_v25 }
 0x2b0   : > { %3631 = vmatprep.subr.bf16.mxu1 %v4079_v10 }
 0x2b1   : > { %v945_v26 = vpop.permute.xlu1 %944 }
 0x2b2   : > { %v950_v28 = vsel %vm896_vm3, %v945_v26, 0 }
 0x2b5   : > { %v994_v27 = vpop.permute.xlu1 %993 }
 0x2b6   : > { %3628 = vmatmul.mubr.msk.bf16.vlgmr.msra.gmra.mxu1 %vm896_vm3, %v4316_v16  ;;  %v999_v31 = vsel %vm896_vm3, %v994_v27, 0 }
 0x2b7   : > { %3632 = vmatpush3.bf16.xpose.msra.mxu1 %v950_v28  ;;  %3633 = vmatprep.mubr.msk.bf16.mxu1 %vm4080_vm2, %v4079_v10 }
 0x2b8   : > { %3637 = vmatprep.subr.bf16.mxu1 %v4079_v10 }
 0x2b9   : > { %v1043_v29 = vpop.permute.xlu1 %1042 }
 0x2ba   : > { %v1048_v30 = vsel %vm896_vm3, %v1043_v29, 0 }
 0x2bb   : > { %3644 = vmatpush3.bf16.xpose.msra.mxu0 %v1048_v30 }
 0x2bc   : > { %3655 = vmatprep.subr.bf16.mxu0 %v4079_v10 }
 0x2be   : > { %3634 = vmatmul.mubr.msk.bf16.vlgmr.msra.gmra.mxu1 %vm896_vm3, %v4319_v20 }
 0x2bf   : > { %3638 = vmatpush3.bf16.xpose.msra.mxu1 %v999_v31  ;;  %3639 = vmatprep.mubr.msk.bf16.mxu1 %vm4080_vm2, %v4079_v10 }
 0x2c0   : > { %3649 = vmatprep.subr.bf16.mxu1 %v4079_v10 }
 0x2c2   : > { %3646 = vmatmul.mubr.msk.bf16.vlgmr.msra.gmra.mxu0 %vm896_vm3, %v4325_v23 }
 0x2c3   : > { %3657 = vmatprep.mubr.msk.bf16.mxu0 %vm4080_vm2, %v4079_v10 }
 0x2c6   : > { %3640 = vmatmul.mubr.msk.bf16.vlgmr.msra.gmra.mxu1 %vm896_vm3, %v4322_v21 }
 0x2c7   : > { %3651 = vmatprep.mubr.msk.bf16.mxu1 %vm4080_vm2, %v4079_v10 }
 0x376   : > { %v937_v33 = vpop.f32.mrf.mxu1 }
 0x377   : > { %v938_v34 = vadd.f32 %v937_v33, %v4355_v32 }
 0x378   : > { %v3629_v35 = vpop.f32.mrf.mxu1 }
 0x379   : > { %v1090_v36 = vsel %vm896_vm3, %v938_v34, -inf }
 0x37a   : > { %1091 = vmax.xlane.f32.xlu0 %v1090_v36  ;;  %v940_v37 = vpop.f32.mrf.mxu1 }
 0x37c   : > { %v3630_v38 = vpop.f32.mrf.mxu1 }
 0x37e   : > { %v986_v39 = vpop.f32.mrf.mxu1 }
 0x37f   : > { %v987_v40 = vadd.f32 %v986_v39, %v4355_v32 }
 0x380   : > { %v3635_v41 = vpop.f32.mrf.mxu1 }
 0x381   : > { %v1093_v42 = vsel %vm896_vm3, %v987_v40, -inf }
 0x382   : > { %v1084_v43 = vpop.f32.mrf.mxu0  ;;  %1094 = vmax.xlane.f32.xlu1 %v1093_v42  ;;  %v989_v44 = vpop.f32.mrf.mxu1 }
 0x383   : > { %v1085_v52 = vadd.f32 %v1084_v43, %v4355_v32 }
 0x384   : > { %v3636_v45 = vpop.f32.mrf.mxu1  ;;  %v3647_v46 = vpop.f32.mrf.mxu0 }
 0x385   : > { %v1099_v56 = vsel %vm896_vm3, %v1085_v52, -inf }
 0x386   : > { %v1035_v47 = vpop.f32.mrf.mxu1  ;;  %v1087_v48 = vpop.f32.mrf.mxu0 }
 0x387   : > { %v1036_v49 = vadd.f32 %v1035_v47, %v4355_v32 }
 0x388   : > { %v3641_v50 = vpop.f32.mrf.mxu1  ;;  %v3648_v51 = vpop.f32.mrf.mxu0 }
 0x389   : > { %v1096_v53 = vsel %vm896_vm3, %v1036_v49, -inf }
 0x38a   : > { %1097 = vmax.xlane.f32.xlu0 %v1096_v53  ;;  %v1038_v54 = vpop.f32.mrf.mxu1 }
 0x38c   : > { %v3642_v55 = vpop.f32.mrf.mxu1 }
 0x38e   : > { %1100 = vmax.xlane.f32.xlu0 %v1099_v56 }
 0x393   : > { %1187 = vrot.lane.b32.xlu1 %v4319_v20, %s4082_s20 }
 0x397   : > { %1235 = vrot.lane.b32.xlu1 %v4322_v21, %s4082_s20 }
 0x403   : > { %v1092_v57 = vpop.xlane.xlu0 %1091 }
 0x404   : > { %v1102_v58 = vsub.f32 %v938_v34, %v1092_v57 }
 0x406   : > { %v1106_v59 = vmul.f32 1.442695, %v1102_v58 }
 0x408   : > { %3946 = vpow2.f32 %v1106_v59 }
 0x40b   : > { %v1095_v60 = vpop.xlane.xlu1 %1094 }
 0x40c   : > { %v1103_v1 = vsub.f32 %v987_v40, %v1095_v60 }
 0x40e   : > { %v1108_v5 = vmul.f32 1.442695, %v1103_v1 }
 0x40f   : > { %v1188_v61 = vpop.permute.xlu1 %1187 }
 0x410   : > { %v1193_v62 = vsel %vm1143_vm4, %v1188_v61, 0 }
 0x411   : > { %3656 = vmatpush3.bf16.msra.mxu0 %v1193_v62 }
 0x412   : > { %3667 = vmatprep.subr.bf16.mxu0 %v4079_v10 }
 0x413   : > { %v1098_v63 = vpop.xlane.xlu0 %1097  ;;  %v1236_v25 = vpop.permute.xlu1 %1235 }
 0x414   : > { %v1104_v12 = vsub.f32 %v1036_v49, %v1098_v63  ;;  %v1241_v27 = vsel %vm1143_vm4, %v1236_v25, 0 }
 0x415   : > { %v3947_v0 = vpop.eup %3946 }
 0x416   : > { %v1114_v2 = vsel %vm896_vm3, %v3947_v0, 0.0  ;;  %v1110_v13 = vmul.f32 1.442695, %v1104_v12 }
 0x417   : > { %1115 = vadd.xlane.f32.xlu0 %v1114_v2  ;;  %v1101_v3 = vpop.xlane.xlu0 %1100 }
 0x418   : > { %v1105_v4 = vsub.f32 %v1085_v52, %v1101_v3 }
 0x41a   : > { %v1112_v6 = vmul.f32 1.442695, %v1105_v4 }
 0x41c   : > { %3948 = vpow2.f32 %v1112_v6 }
 0x41d   : > { %3950 = vpow2.f32 %v1108_v5 }
 0x41e   : > { %3952 = vpow2.f32 %v1110_v13 }
 0x429   : > { %v3949_v7 = vpop.eup %3948 }
 0x42a   : > { %v1123_v8 = vsel %vm896_vm3, %v3949_v7, 0.0  ;;  %v3951_v9 = vpop.eup %3950 }
 0x42b   : > { %1124 = vadd.xlane.f32.xlu1 %v1123_v8  ;;  %v1117_v11 = vsel %vm896_vm3, %v3951_v9, 0.0  ;;  %v3953_v14 = vpop.eup %3952 }
 0x42c   : > { %v1120_v15 = vsel %vm896_vm3, %v3953_v14, 0.0 }
 0x42d   : > { %1138 = vrot.lane.b32.xlu0 %v4316_v16, %s4082_s20 }
 0x42f   : > { %1118 = vadd.xlane.f32.xlu1 %v1117_v11 }
 0x440   : > { %1283 = vrot.lane.b32.xlu1 %v4325_v23, %s4082_s20  ;;  %s4806_s20 = scalar_lea.vmem %s4766_s8, %s4206_s26 }
 0x444   : > { %1385 = vrot.lane.b32.xlu1 %v4319_v20, %s4083_s21 }
 0x448   : > { %1383 = vrot.lane.b32.xlu1 %v4319_v20, %s4084_s23 }
 0x44c   : > { %1121 = vadd.xlane.f32.xlu0 %v1120_v15  ;;  %1485 = vrot.lane.b32.xlu1 %v4325_v23, %s4083_s21 }
 0x450   : > { %1483 = vrot.lane.b32.xlu1 %v4325_v23, %s4084_s23 }
 0x462   : > { %1335 = vrot.lane.b32.xlu0 %v4316_v16, %s4083_s21 }
 0x466   : > { %1333 = vrot.lane.b32.xlu0 %v4316_v16, %s4084_s23 }
 0x46a   : > { %1435 = vrot.lane.b32.xlu0 %v4322_v21, %s4083_s21 }
 0x46e   : > { %1433 = vrot.lane.b32.xlu0 %v4322_v21, %s4084_s23  ;;  %s4807_s23 = scalar_lea.vmem %s4767_s9, %s4206_s26 }
 0x4a0   : > { %v1116_v17 = vpop.xlane.xlu0 %1115 }
 0x4a1   : > { %3954 = vrcp.f32 %v1116_v17 }
 0x4a4   : > { %v1139_v18 = vpop.permute.xlu0 %1138 }
 0x4a5   : > { %v1145_v19 = vsel %vm1143_vm4, %v1139_v18, 0 }
 0x4a6   : > { %3650 = vmatpush3.bf16.msra.mxu1 %v1145_v19 }
 0x4a7   : > { %3661 = vmatprep.subr.bf16.mxu1 %v4079_v10 }
 0x4ae   : > { %v3955_v22 = vpop.eup %3954 }
 0x4af   : > { %v1130_v24 = vmul.f32 %v3955_v22, %v3947_v0 }
 0x4b1   : > { %v1134_v26 = vpack.c.bf16 %v1130_v24, %v1130_v24 }
 0x4b3   : > { %3652 = vmatmul.mubr.msk.bf16.vlgmr.msra.gmra.mxu1 %vm896_vm3, %v1134_v26 }
 0x4b4   : > { %3662 = vmatpush3.bf16.msra.mxu1 %v1241_v27  ;;  %v1125_v28 = vpop.xlane.xlu1 %1124  ;;  %3663 = vmatprep.mubr.msk.bf16.mxu1 %vm4080_vm2, %v4079_v10 }
 0x4b5   : > { %3673 = vmatprep.subr.bf16.mxu1 %v4079_v10 }
 0x4b8   : > { %v1119_v29 = vpop.xlane.xlu1 %1118 }
 0x4b9   : > { %3956 = vrcp.f32 %v1119_v29 }
 0x4ba   : > { %3958 = vrcp.f32 %v1125_v28 }
 0x4bc   : > { %v1284_v31 = vpop.permute.xlu1 %1283 }
 0x4bd   : > { %v1289_v36 = vsel %vm1143_vm4, %v1284_v31, 0 }
 0x4c0   : > { %v1386_v37 = vpop.permute.xlu1 %1385 }
 0x4c1   : > { %v1391_v41 = vsel %vm896_vm3, %v1386_v37, 0 }
 0x4c4   : > { %v1384_v40 = vpop.permute.xlu1 %1383 }
 0x4c6   : > { %v3957_v30 = vpop.eup %3956 }
 0x4c7   : > { %v1131_v33 = vmul.f32 %v3957_v30, %v3951_v9  ;;  %v3959_v35 = vpop.eup %3958 }
 0x4c8   : > { %v1133_v38 = vmul.f32 %v3959_v35, %v3949_v7  ;;  %v1486_v43 = vpop.permute.xlu1 %1485 }
 0x4c9   : > { %v1135_v34 = vpack.c.bf16 %v1131_v33, %v1131_v33  ;;  %v1491_v44 = vsel %vm896_vm3, %v1486_v43, 0 }
 0x4ca   : > { %v1137_v39 = vpack.c.bf16 %v1133_v38, %v1133_v38 }
 0x4cb   : > { %3658 = vmatmul.mubr.msk.bf16.vlgmr.msra.gmra.mxu0 %vm896_vm3, %v1135_v34 }
 0x4cc   : > { %3668 = vmatpush3.bf16.msra.mxu0 %v1289_v36  ;;  %3669 = vmatprep.mubr.msk.bf16.mxu0 %vm4080_vm2, %v4079_v10  ;;  %v1484_v46 = vpop.permute.xlu1 %1483 }
 0x4cd   : > { %3679 = vmatprep.subr.bf16.mxu0 %v4079_v10 }
 0x4d3   : > { %3670 = vmatmul.mubr.msk.bf16.vlgmr.msra.gmra.mxu0 %vm896_vm3, %v1137_v39 }
 0x4d4   : > { %3680 = vmatpush3.bf16.xpose.msra.mxu0 %v1391_v41  ;;  %3681 = vmatprep.mubr.msk.bf16.mxu0 %vm4080_vm2, %v4079_v10 }
 0x4d5   : > { %v1122_v42 = vpop.xlane.xlu0 %1121  ;;  %3691 = vmatprep.subr.bf16.mxu0 %v4079_v10 }
 0x4d6   : > { %3960 = vrcp.f32 %v1122_v42 }
 0x4d9   : > { %v1336_v45 = vpop.permute.xlu0 %1335 }
 0x4da   : > { %v1341_v51 = vsel %vm896_vm3, %v1336_v45, 0 }
 0x4db   : > { %3682 = vmatmul.mubr.msk.bf16.vlgmr.msra.gmra.mxu0 %vm896_vm3, %v1384_v40 }
 0x4dc   : > { %3692 = vmatpush3.bf16.xpose.msra.mxu0 %v1491_v44  ;;  %3693 = vmatprep.mubr.msk.bf16.mxu0 %vm4080_vm2, %v4079_v10 }
 0x4dd   : > { %3703 = vmatprep.subr.bf16.mxu0 %v4079_v10  ;;  %v1334_v50 = vpop.permute.xlu0 %1333 }
 0x4e1   : > { %v1436_v52 = vpop.permute.xlu0 %1435 }
 0x4e2   : > { %v1441_v53 = vsel %vm896_vm3, %v1436_v52, 0 }
 0x4e3   : > { %v3961_v47 = vpop.eup %3960  ;;  %3694 = vmatmul.mubr.msk.bf16.vlgmr.msra.gmra.mxu0 %vm896_vm3, %v1484_v46 }
 0x4e4   : > { %v1132_v48 = vmul.f32 %v3961_v47, %v3953_v14  ;;  %3705 = vmatprep.mubr.msk.bf16.mxu0 %vm4080_vm2, %v4079_v10 }
 0x4e5   : > { %v1434_v54 = vpop.permute.xlu0 %1433 }
 0x4e6   : > { %v1136_v49 = vpack.c.bf16 %v1132_v48, %v1132_v48 }
 0x4e8   : > { %3664 = vmatmul.mubr.msk.bf16.vlgmr.msra.gmra.mxu1 %vm896_vm3, %v1136_v49 }
 0x4e9   : > { %3674 = vmatpush3.bf16.xpose.msra.mxu1 %v1341_v51  ;;  %3675 = vmatprep.mubr.msk.bf16.mxu1 %vm4080_vm2, %v4079_v10 }
 0x4ea   : > { %3685 = vmatprep.subr.bf16.mxu1 %v4079_v10 }
 0x4f0   : > { %3676 = vmatmul.mubr.msk.bf16.vlgmr.msra.gmra.mxu1 %vm896_vm3, %v1334_v50 }
 0x4f1   : > { %3686 = vmatpush3.bf16.xpose.msra.mxu1 %v1441_v53  ;;  %3687 = vmatprep.mubr.msk.bf16.mxu1 %vm4080_vm2, %v4079_v10 }
 0x4f2   : > { %3697 = vmatprep.subr.bf16.mxu1 %v4079_v10 }
 0x4f8   : > { %3688 = vmatmul.mubr.msk.bf16.vlgmr.msra.gmra.mxu1 %vm896_vm3, %v1434_v54 }
 0x4f9   : > { %3699 = vmatprep.mubr.msk.bf16.mxu1 %vm4080_vm2, %v4079_v10 }
 0x573   : > { %v4425_v55 = vpop.f32.mrf.mxu1 }
 0x575   : > { %v3653_v56 = vpop.f32.mrf.mxu1 }
 0x577   : > { %v1184_v57 = vpop.f32.mrf.mxu1 }
 0x579   : > { %v3654_v58 = vpop.f32.mrf.mxu1 }
 0x58b   : > { %v4427_v59 = vpop.f32.mrf.mxu0 }
 0x58c   : > { %v1331_v60 = vpack.c.bf16 %v4427_v59, %v4425_v55 }
 0x58d   : > { %v3659_v61 = vpop.f32.mrf.mxu0 }
 0x58f   : > { %v1232_v62 = vpop.f32.mrf.mxu0 }
 0x591   : > { %v3660_v63 = vpop.f32.mrf.mxu0 }
 0x593   : > { %v4431_v0 = vpop.f32.mrf.mxu0 }
 0x595   : > { %v3671_v1 = vpop.f32.mrf.mxu0 }
 0x597   : > { %v1328_v2 = vpop.f32.mrf.mxu0 }
 0x599   : > { %v3672_v3 = vpop.f32.mrf.mxu0 }
 0x59b   : > { %v1427_v4 = vpop.f32.mrf.mxu0 }
 0x59c   : > { %v1428_v5 = vadd.f32 %v1427_v4, %v4355_v32 }
 0x59d   : > { %v3683_v6 = vpop.f32.mrf.mxu0 }
 0x59e   : > { %v1536_v7 = vsel %vm896_vm3, %v1428_v5, -inf }
 0x59f   : > { %1537 = vmax.xlane.f32.xlu1 %v1536_v7  ;;  %v1430_v8 = vpop.f32.mrf.mxu0 }
 0x5a1   : > { %v3684_v9 = vpop.f32.mrf.mxu0 }
 0x5a3   : > { %v1527_v11 = vpop.f32.mrf.mxu0 }
 0x5a4   : > { %v1528_v34 = vadd.f32 %v1527_v11, %v4355_v32 }
 0x5a5   : > { %v3695_v12 = vpop.f32.mrf.mxu0 }
 0x5a6   : > { %v1542_v38 = vsel %vm896_vm3, %v1528_v34, -inf }
 0x5a7   : > { %v1530_v13 = vpop.f32.mrf.mxu0 }
 0x5a8   : > { %v4435_v14 = vpop.f32.mrf.mxu1 }
 0x5a9   : > { %v1332_v15 = vpack.c.bf16 %v4431_v0, %v4435_v14  ;;  %v3696_v17 = vpop.f32.mrf.mxu0  ;;  %v886_v0 = vld [vmem:[%s4232_s30 + $0x4] sm:$0xf] }
 0x5aa   : > { %v3665_v18 = vpop.f32.mrf.mxu1  ;;  %v1782_v14 = vsel %vm1143_vm4, %v886_v0, 0 }
 0x5ac   : > { %v1280_v19 = vpop.f32.mrf.mxu1 }
 0x5ae   : > { %v3666_v22 = vpop.f32.mrf.mxu1 }
 0x5b0   : > { %v1377_v24 = vpop.f32.mrf.mxu1 }
 0x5b1   : > { %v1378_v25 = vadd.f32 %v1377_v24, %v4355_v32 }
 0x5b2   : > { %v3677_v26 = vpop.f32.mrf.mxu1 }
 0x5b3   : > { %v1533_v27 = vsel %vm896_vm3, %v1378_v25, -inf  ;;  %v885_v26 = vld [vmem:[%s4232_s30] sm:$0xf] }
 0x5b4   : > { %1534 = vmax.xlane.f32.xlu0 %v1533_v27  ;;  %v1380_v28 = vpop.f32.mrf.mxu1 }
 0x5b6   : > { %v3678_v29 = vpop.f32.mrf.mxu1 }
 0x5b8   : > { %v1477_v30 = vpop.f32.mrf.mxu1 }
 0x5b9   : > { %v1478_v31 = vadd.f32 %v1477_v30, %v4355_v32 }
 0x5ba   : > { %v3689_v33 = vpop.f32.mrf.mxu1 }
 0x5bb   : > { %v1539_v35 = vsel %vm896_vm3, %v1478_v31, -inf }
 0x5bc   : > { %1540 = vmax.xlane.f32.xlu0 %v1539_v35  ;;  %v1480_v36 = vpop.f32.mrf.mxu1 }
 0x5be   : > { %v3690_v37 = vpop.f32.mrf.mxu1 }
 0x5c0   : > { %1543 = vmax.xlane.f32.xlu0 %v1542_v38 }
 0x628   : > { %v1538_v39 = vpop.xlane.xlu1 %1537 }
 0x629   : > { %v1546_v40 = vsub.f32 %v1428_v5, %v1538_v39 }
 0x62b   : > { %v1551_v41 = vmul.f32 1.442695, %v1546_v40 }
 0x62d   : > { %3962 = vpow2.f32 %v1551_v41 }
 0x63a   : > { %v3963_v42 = vpop.eup %3962 }
 0x63b   : > { %v1560_v43 = vsel %vm896_vm3, %v3963_v42, 0.0 }
 0x63c   : > { %1561 = vadd.xlane.f32.xlu1 %v1560_v43 }
 0x63d   : > { %v1535_v44 = vpop.xlane.xlu0 %1534 }
 0x63e   : > { %v1545_v45 = vsub.f32 %v1378_v25, %v1535_v44 }
 0x640   : > { %v1549_v46 = vmul.f32 1.442695, %v1545_v45 }
 0x642   : > { %3964 = vpow2.f32 %v1549_v46 }
 0x645   : > { %v1541_v47 = vpop.xlane.xlu0 %1540 }
 0x646   : > { %v1547_v48 = vsub.f32 %v1478_v31, %v1541_v47  ;;  %v1840_v31 = vsel %vm1143_vm4, %v885_v26, 0 }
 0x648   : > { %v1553_v49 = vmul.f32 1.442695, %v1547_v48 }
 0x649   : > { %v1544_v54 = vpop.xlane.xlu0 %1543 }
 0x64a   : > { %3966 = vpow2.f32 %v1553_v49  ;;  %v1548_v56 = vsub.f32 %v1528_v34, %v1544_v54 }
 0x64c   : > { %v1555_v57 = vmul.f32 1.442695, %v1548_v56 }
 0x64d   : > { %1629 = vrot.lane.b32.xlu1 %v4319_v20, %s4085_s22 }
 0x64e   : > { %3968 = vpow2.f32 %v1555_v57 }
 0x64f   : > { %v3965_v50 = vpop.eup %3964 }
 0x650   : > { %v1557_v51 = vsel %vm896_vm3, %v3965_v50, 0.0 }
 0x651   : > { %1677 = vrot.lane.b32.xlu1 %v4322_v21, %s4085_s22  ;;  %1558 = vadd.xlane.f32.xlu0 %v1557_v51 }
 0x657   : > { %v3967_v52 = vpop.eup %3966 }
 0x658   : > { %v1563_v53 = vsel %vm896_vm3, %v3967_v52, 0.0 }
 0x659   : > { %1564 = vadd.xlane.f32.xlu0 %v1563_v53 }
 0x65b   : > { %v3969_v58 = vpop.eup %3968 }
 0x65c   : > { %v1566_v61 = vsel %vm896_vm3, %v3969_v58, 0.0 }
 0x66f   : > { %1581 = vrot.lane.b32.xlu0 %v4316_v16, %s4085_s22 }
 0x673   : > { %1893 = vrot.lane.b32.xlu0 %v4316_v16, %s4086_s24 }
 0x675   : > { %1567 = vadd.xlane.f32.xlu1 %v1566_v61 }
 0x677   : > { %1891 = vrot.lane.b32.xlu0 %v4316_v16, %s4087_s15 }
 0x67b   : > { %1993 = vrot.lane.b32.xlu0 %v4322_v21, %s4086_s24 }
 0x67f   : > { %1991 = vrot.lane.b32.xlu0 %v4322_v21, %s4087_s15 }
 0x686   : > { %1725 = vrot.lane.b32.xlu1 %v4325_v23, %s4085_s22 }
 0x68a   : > { %1943 = vrot.lane.b32.xlu1 %v4319_v20, %s4086_s24 }
 0x68e   : > { %1941 = vrot.lane.b32.xlu1 %v4319_v20, %s4087_s15 }
 0x692   : > { %2043 = vrot.lane.b32.xlu1 %v4325_v23, %s4086_s24 }
 0x696   : > { %2041 = vrot.lane.b32.xlu1 %v4325_v23, %s4087_s15  ;;  %s4808_s15 = scalar_lea.vmem %s4768_s10, %s4206_s26  ;;  %s4809_s26 = sld [smem:[#allocation3_spill]] }
 0x69c   : > { %p3516_p8 = scmp.ne.s32.totalorder %s4809_s26, 1 }
 0x6c5   : > { %v1562_v62 = vpop.xlane.xlu1 %1561 }
 0x6c6   : > { %3970 = vrcp.f32 %v1562_v62 }
 0x6c9   : > { %v1630_v63 = vpop.permute.xlu1 %1629 }
 0x6ca   : > { %v1635_v1 = vsel %vm1143_vm4, %v1630_v63, 0 }
 0x6cb   : > { %3704 = vmatpush3.bf16.msra.mxu0 %v1635_v1 }
 0x6cc   : > { %3715 = vmatprep.subr.bf16.mxu0 %v4079_v10 }
 0x6cd   : > { %v1678_v12 = vpop.permute.xlu1 %1677 }
 0x6ce   : > { %v1683_v17 = vsel %vm1143_vm4, %v1678_v12, 0 }
 0x6d3   : > { %v3971_v2 = vpop.eup %3970 }
 0x6d4   : > { %v1574_v3 = vmul.f32 %v3971_v2, %v3963_v42 }
 0x6d6   : > { %v1578_v4 = vpack.c.bf16 %v1574_v3, %v1574_v3 }
 0x6d8   : > { %3706 = vmatmul.mubr.msk.bf16.vlgmr.msra.gmra.mxu0 %vm896_vm3, %v1578_v4 }
 0x6d9   : > { %3717 = vmatprep.mubr.msk.bf16.mxu0 %vm4080_vm2, %v4079_v10 }
 0x6da   : > { %v1559_v5 = vpop.xlane.xlu0 %1558 }
 0x6db   : > { %3972 = vrcp.f32 %v1559_v5 }
 0x6e2   : > { %v1565_v6 = vpop.xlane.xlu0 %1564 }
 0x6e3   : > { %3974 = vrcp.f32 %v1565_v6 }
 0x6e6   : > { %v1582_v7 = vpop.permute.xlu0 %1581 }
 0x6e7   : > { %v1587_v8 = vsel %vm1143_vm4, %v1582_v7, 0 }
 0x6e8   : > { %v3973_v9 = vpop.eup %3972  ;;  %3698 = vmatpush3.bf16.msra.mxu1 %v1587_v8 }
 0x6e9   : > { %3709 = vmatprep.subr.bf16.mxu1 %v4079_v10  ;;  %v1573_v11 = vmul.f32 %v3973_v9, %v3965_v50 }
 0x6ea   : > { %v1894_v48 = vpop.permute.xlu0 %1893 }
 0x6eb   : > { %v1577_v13 = vpack.c.bf16 %v1573_v11, %v1573_v11  ;;  %v1899_v53 = vsel %vm896_vm3, %v1894_v48, 0 }
 0x6ed   : > { %3700 = vmatmul.mubr.msk.bf16.vlgmr.msra.gmra.mxu1 %vm896_vm3, %v1577_v13 }
 0x6ee   : > { %3710 = vmatpush3.bf16.msra.mxu1 %v1683_v17  ;;  %3711 = vmatprep.mubr.msk.bf16.mxu1 %vm4080_vm2, %v4079_v10  ;;  %v1892_v51 = vpop.permute.xlu0 %1891 }
 0x6ef   : > { %3869 = vmatprep.subr.msk.bf16.mxu1 %vm1143_vm4, %v886_v0 }
 0x6f0   : > { %v3975_v18 = vpop.eup %3974 }
 0x6f1   : > { %v1575_v19 = vmul.f32 %v3975_v18, %v3967_v52 }
 0x6f2   : > { %v1994_v57 = vpop.permute.xlu0 %1993 }
 0x6f3   : > { %v1579_v22 = vpack.c.bf16 %v1575_v19, %v1575_v19  ;;  %v1999_v62 = vsel %vm896_vm3, %v1994_v57, 0 }
 0x6f5   : > { %3712 = vmatmul.mubr.msk.bf16.vlgmr.msra.gmra.mxu1 %vm896_vm3, %v1579_v22 }
 0x6f6   : > { %3722 = vmatpush3.bf16.msra.mxu1 %v1782_v14  ;;  %v1992_v4 = vpop.permute.xlu0 %1991 }
 0x6f7   : > { %3733 = vmatprep.subr.bf16.mxu1 %v4079_v10 }
 0x6fe   : > { %v1568_v24 = vpop.xlane.xlu1 %1567 }
 0x6ff   : > { %3976 = vrcp.f32 %v1568_v24 }
 0x702   : > { %v1726_v25 = vpop.permute.xlu1 %1725 }
 0x703   : > { %v1731_v27 = vsel %vm1143_vm4, %v1726_v25, 0 }
 0x704   : > { %3716 = vmatpush3.bf16.msra.mxu0 %v1731_v27 }
 0x705   : > { %3870 = vmatprep.subr.msk.bf16.mxu0 %vm1143_vm4, %v885_v26 }
 0x706   : > { %v1944_v33 = vpop.permute.xlu1 %1943 }
 0x707   : > { %v1949_v35 = vsel %vm896_vm3, %v1944_v33, 0 }
 0x70a   : > { %v1942_v34 = vpop.permute.xlu1 %1941 }
 0x70c   : > { %v3977_v28 = vpop.eup %3976 }
 0x70d   : > { %v1576_v29 = vmul.f32 %v3977_v28, %v3969_v58 }
 0x70e   : > { %v2044_v55 = vpop.permute.xlu1 %2043 }
 0x70f   : > { %v1580_v30 = vpack.c.bf16 %v1576_v29, %v1576_v29  ;;  %v2049_v59 = vsel %vm896_vm3, %v2044_v55, 0 }
 0x711   : > { %3718 = vmatmul.mubr.msk.bf16.vlgmr.msra.gmra.mxu0 %vm896_vm3, %v1580_v30 }
 0x712   : > { %3729 = vmatprep.mubr.msk.bf16.mxu0 %vm896_vm3, %v1331_v60  ;;  %3728 = vmatpush3.bf16.msra.mxu0 %v1840_v31  ;;  %v2042_v60 = vpop.permute.xlu1 %2041 }
 0x713   : > { %3739 = vmatprep.subr.bf16.mxu0 %v4079_v10 }
 0x719   : > { %3730 = vmatmul.mubr.msk.bf16.vlgmr.msra.gmra.mxu0 %vm896_vm3, %v1332_v15 }
 0x71a   : > { %3740 = vmatpush3.bf16.xpose.msra.mxu0 %v1949_v35  ;;  %3741 = vmatprep.mubr.msk.bf16.mxu0 %vm4080_vm2, %v4079_v10 }
 0x71b   : > { %3751 = vmatprep.subr.bf16.mxu0 %v4079_v10 }
 0x721   : > { %3742 = vmatmul.mubr.msk.bf16.vlgmr.msra.gmra.mxu0 %vm896_vm3, %v1942_v34 }
 0x722   : > { %3752 = vmatpush3.bf16.xpose.msra.mxu0 %v2049_v59  ;;  %3753 = vmatprep.mubr.msk.bf16.mxu0 %vm4080_vm2, %v4079_v10 }
 0x723   : > { %3763 = vmatprep.subr.bf16.mxu0 %v4079_v10 }
 0x729   : > { %3754 = vmatmul.mubr.msk.bf16.vlgmr.msra.gmra.mxu0 %vm896_vm3, %v2042_v60 }
 0x72a   : > { %3765 = vmatprep.mubr.msk.bf16.mxu0 %vm4080_vm2, %v4079_v10 }
 0x798   : > { %v1671_v15 = vpop.f32.mrf.mxu0 }
 0x79a   : > { %v3707_v36 = vpop.f32.mrf.mxu0 }
 0x79c   : > { %v1674_v37 = vpop.f32.mrf.mxu0 }
 0x79e   : > { %v3708_v38 = vpop.f32.mrf.mxu0 }
 0x7ad   : > { %v1623_v39 = vpop.f32.mrf.mxu1 }
 0x7ae   : > { %v1773_v40 = vpack.c.bf16 %v1671_v15, %v1623_v39 }
 0x7af   : > { %v3701_v41 = vpop.f32.mrf.mxu1 }
 0x7b0   : > { %3723 = vmatprep.mubr.msk.bf16.mxu1 %vm896_vm3, %v1773_v40 }
 0x7b1   : > { %v1626_v42 = vpop.f32.mrf.mxu1 }
 0x7b3   : > { %v3702_v43 = vpop.f32.mrf.mxu1 }
 0x7b5   : > { %v1719_v44 = vpop.f32.mrf.mxu1 }
 0x7b7   : > { %v3713_v45 = vpop.f32.mrf.mxu1 }
 0x7b9   : > { %v1722_v46 = vpop.f32.mrf.mxu1 }
 0x7bb   : > { %v3714_v47 = vpop.f32.mrf.mxu1 }
 0x7d1   : > { %v1767_v49 = vpop.f32.mrf.mxu0 }
 0x7d2   : > { %v1774_v50 = vpack.c.bf16 %v1767_v49, %v1719_v44 }
 0x7d3   : > { %v3719_v52 = vpop.f32.mrf.mxu0 }
 0x7d4   : > { %3724 = vmatmul.mubr.msk.bf16.vlgmr.msra.gmra.mxu1 %vm896_vm3, %v1774_v50 }
 0x7d5   : > { %3734 = vmatpush3.bf16.xpose.msra.mxu1 %v1899_v53  ;;  %v1770_v54 = vpop.f32.mrf.mxu0  ;;  %3735 = vmatprep.mubr.msk.bf16.mxu1 %vm4080_vm2, %v4079_v10 }
 0x7d6   : > { %3745 = vmatprep.subr.bf16.mxu1 %v4079_v10 }
 0x7d7   : > { %v3720_v56 = vpop.f32.mrf.mxu0 }
 0x7d9   : > { %v4509_v58 = vpop.f32.mrf.mxu0 }
 0x7db   : > { %v4511_v61 = vpop.f32.mrf.mxu0 }
 0x7dc   : > { %3736 = vmatmul.mubr.msk.bf16.vlgmr.msra.gmra.mxu1 %vm896_vm3, %v1892_v51 }
 0x7dd   : > { %3746 = vmatpush3.bf16.xpose.msra.mxu1 %v1999_v62  ;;  %v4515_v63 = vpop.f32.mrf.mxu0  ;;  %3747 = vmatprep.mubr.msk.bf16.mxu1 %vm4080_vm2, %v4079_v10 }
 0x7de   : > { %3757 = vmatprep.subr.bf16.mxu1 %v4079_v10 }
 0x7df   : > { %v4520_v1 = vpop.f32.mrf.mxu0 }
 0x7e1   : > { %v1985_v2 = vpop.f32.mrf.mxu0 }
 0x7e2   : > { %v1986_v3 = vadd.f32 %v1985_v2, %v4355_v32 }
 0x7e3   : > { %v3743_v5 = vpop.f32.mrf.mxu0 }
 0x7e4   : > { %3748 = vmatmul.mubr.msk.bf16.vlgmr.msra.gmra.mxu1 %vm896_vm3, %v1992_v4  ;;  %v2094_v6 = vsel %vm896_vm3, %v1986_v3, -inf }
 0x7e5   : > { %2095 = vmax.xlane.f32.xlu1 %v2094_v6  ;;  %v1988_v7 = vpop.f32.mrf.mxu0  ;;  %3759 = vmatprep.mubr.msk.bf16.mxu1 %vm4080_vm2, %v4079_v10 }
 0x7e7   : > { %v3744_v8 = vpop.f32.mrf.mxu0 }
 0x7e9   : > { %v2085_v9 = vpop.f32.mrf.mxu0 }
 0x7ea   : > { %v2086_v0 = vadd.f32 %v2085_v9, %v4355_v32 }
 0x7eb   : > { %v3755_v11 = vpop.f32.mrf.mxu0 }
 0x7ec   : > { %v2100_v37 = vsel %vm896_vm3, %v2086_v0, -inf }
 0x7ed   : > { %v2088_v12 = vpop.f32.mrf.mxu0 }
 0x7ef   : > { %v3756_v13 = vpop.f32.mrf.mxu0 }
 0x86e   : > { %v2096_v17 = vpop.xlane.xlu1 %2095 }
 0x86f   : > { %v2104_v18 = vsub.f32 %v1986_v3, %v2096_v17 }
 0x871   : > { %v2109_v19 = vmul.f32 1.442695, %v2104_v18 }
 0x873   : > { %3978 = vpow2.f32 %v2109_v19 }
 0x880   : > { %v4527_v22 = vpop.eup %3978 }
 0x881   : > { %v2118_v24 = vsel %vm896_vm3, %v4527_v22, 0.0 }
 0x882   : > { %2119 = vadd.xlane.f32.xlu1 %v2118_v24 }
 0x894   : > { %v4531_v25 = vpop.f32.mrf.mxu1 }
 0x896   : > { %v4533_v26 = vpop.f32.mrf.mxu1 }
 0x898   : > { %v4535_v27 = vpop.f32.mrf.mxu1 }
 0x89a   : > { %v4537_v28 = vpop.f32.mrf.mxu1 }
 0x89c   : > { %v1935_v29 = vpop.f32.mrf.mxu1 }
 0x89d   : > { %v1936_v30 = vadd.f32 %v1935_v29, %v4355_v32 }
 0x89e   : > { %v3737_v31 = vpop.f32.mrf.mxu1 }
 0x89f   : > { %v2091_v33 = vsel %vm896_vm3, %v1936_v30, -inf }
 0x8a0   : > { %2092 = vmax.xlane.f32.xlu0 %v2091_v33  ;;  %v1938_v34 = vpop.f32.mrf.mxu1 }
 0x8a2   : > { %v3738_v35 = vpop.f32.mrf.mxu1 }
 0x8a4   : > { %v2035_v55 = vpop.f32.mrf.mxu1 }
 0x8a5   : > { %v2036_v59 = vadd.f32 %v2035_v55, %v4355_v32 }
 0x8a6   : > { %v3749_v60 = vpop.f32.mrf.mxu1 }
 0x8a7   : > { %v2097_v14 = vsel %vm896_vm3, %v2036_v59, -inf }
 0x8a8   : > { %2098 = vmax.xlane.f32.xlu0 %v2097_v14  ;;  %v2038_v15 = vpop.f32.mrf.mxu1 }
 0x8aa   : > { %v3750_v36 = vpop.f32.mrf.mxu1 }
 0x8ac   : > { %2101 = vmax.xlane.f32.xlu0 %v2100_v37 }
 0x90b   : > { %v2120_v53 = vpop.xlane.xlu1 %2119 }
 0x929   : > { %v2093_v38 = vpop.xlane.xlu0 %2092 }
 0x92a   : > { %v2103_v39 = vsub.f32 %v1936_v30, %v2093_v38 }
 0x92c   : > { %v2107_v40 = vmul.f32 1.442695, %v2103_v39 }
 0x92e   : > { %3980 = vpow2.f32 %v2107_v40 }
 0x931   : > { %v2099_v41 = vpop.xlane.xlu0 %2098 }
 0x932   : > { %v2105_v42 = vsub.f32 %v2036_v59, %v2099_v41 }
 0x934   : > { %v2111_v43 = vmul.f32 1.442695, %v2105_v42 }
 0x935   : > { %v2102_v44 = vpop.xlane.xlu0 %2101 }
 0x936   : > { %3982 = vpow2.f32 %v2111_v43  ;;  %v2106_v45 = vsub.f32 %v2086_v0, %v2102_v44  ;;  %v887_v0 = vld [vmem:[%s4232_s30 + $0x8] sm:$0xf] }
 0x937   : > { %v2340_v14 = vsel %vm1143_vm4, %v887_v0, 0 }
 0x938   : > { %v2113_v46 = vmul.f32 1.442695, %v2106_v45 }
 0x93a   : > { %3984 = vpow2.f32 %v2113_v46 }
 0x93b   : > { %v3981_v47 = vpop.eup %3980  ;;  %3986 = vrcp.f32 %v2120_v53 }
 0x93c   : > { %v2115_v48 = vsel %vm896_vm3, %v3981_v47, 0.0 }
 0x93d   : > { %2116 = vadd.xlane.f32.xlu0 %v2115_v48 }
 0x943   : > { %v3983_v49 = vpop.eup %3982 }
 0x944   : > { %v2121_v50 = vsel %vm896_vm3, %v3983_v49, 0.0 }
 0x945   : > { %2122 = vadd.xlane.f32.xlu0 %v2121_v50 }
 0x947   : > { %v3985_v51 = vpop.eup %3984 }
 0x948   : > { %v2124_v52 = vsel %vm896_vm3, %v3985_v51, 0.0  ;;  %v3987_v57 = vpop.eup %3986 }
 0x949   : > { %2125 = vadd.xlane.f32.xlu1 %v2124_v52  ;;  %v2132_v6 = vmul.f32 %v3987_v57, %v4527_v22 }
 0x94b   : > { %v2136_v11 = vpack.c.bf16 %v2132_v6, %v2132_v6 }
 0x95a   : > { %2187 = vrot.lane.b32.xlu1 %v4319_v20, %s4088_s29 }
 0x95b   : > { %2139 = vrot.lane.b32.xlu0 %v4316_v16, %s4088_s29 }
 0x95e   : > { %2235 = vrot.lane.b32.xlu1 %v4322_v21, %s4088_s29 }
 0x95f   : > { %2397 = vrot.lane.b32.xlu0 %v4316_v16, %s4089_s7 }
 0x962   : > { %2283 = vrot.lane.b32.xlu1 %v4325_v23, %s4088_s29 }
 0x963   : > { %2395 = vrot.lane.b32.xlu0 %v4316_v16, %s4090_s25 }
 0x966   : > { %2447 = vrot.lane.b32.xlu1 %v4319_v20, %s4089_s7 }
 0x967   : > { %2497 = vrot.lane.b32.xlu0 %v4322_v21, %s4089_s7 }
 0x96a   : > { %2445 = vrot.lane.b32.xlu1 %v4319_v20, %s4090_s25 }
 0x96b   : > { %2495 = vrot.lane.b32.xlu0 %v4322_v21, %s4090_s25 }
 0x96e   : > { %2547 = vrot.lane.b32.xlu1 %v4325_v23, %s4089_s7 }
 0x972   : > { %2545 = vrot.lane.b32.xlu1 %v4325_v23, %s4090_s25 }
 0x9c6   : > { %v2117_v54 = vpop.xlane.xlu0 %2116 }
 0x9c7   : > { %3988 = vrcp.f32 %v2117_v54 }
 0x9ce   : > { %v2123_v56 = vpop.xlane.xlu0 %2122 }
 0x9cf   : > { %3990 = vrcp.f32 %v2123_v56 }
 0x9d2   : > { %v2126_v62 = vpop.xlane.xlu1 %2125  ;;  %v2140_v2 = vpop.permute.xlu0 %2139 }
 0x9d3   : > { %3992 = vrcp.f32 %v2126_v62  ;;  %v2145_v3 = vsel %vm1143_vm4, %v2140_v2, 0 }
 0x9d4   : > { %v3989_v4 = vpop.eup %3988  ;;  %3758 = vmatpush3.bf16.msra.mxu1 %v2145_v3 }
 0x9d5   : > { %v2131_v5 = vmul.f32 %v3989_v4, %v3981_v47  ;;  %3769 = vmatprep.subr.bf16.mxu1 %v4079_v10 }
 0x9d6   : > { %v2188_v7 = vpop.permute.xlu1 %2187  ;;  %v2398_v19 = vpop.permute.xlu0 %2397 }
 0x9d7   : > { %v2193_v8 = vsel %vm1143_vm4, %v2188_v7, 0  ;;  %v2135_v9 = vpack.c.bf16 %v2131_v5, %v2131_v5  ;;  %v2403_v35 = vsel %vm896_vm3, %v2398_v19, 0 }
 0x9d8   : > { %3764 = vmatpush3.bf16.msra.mxu0 %v2193_v8 }
 0x9d9   : > { %3760 = vmatmul.mubr.msk.bf16.vlgmr.msra.gmra.mxu1 %vm896_vm3, %v2135_v9  ;;  %3775 = vmatprep.subr.bf16.mxu0 %v4079_v10 }
 0x9da   : > { %v2236_v12 = vpop.permute.xlu1 %2235  ;;  %3771 = vmatprep.mubr.msk.bf16.mxu1 %vm4080_vm2, %v4079_v10  ;;  %v2396_v34 = vpop.permute.xlu0 %2395 }
 0x9db   : > { %v2241_v13 = vsel %vm1143_vm4, %v2236_v12, 0  ;;  %3766 = vmatmul.mubr.msk.bf16.vlgmr.msra.gmra.mxu0 %vm896_vm3, %v2136_v11 }
 0x9dc   : > { %v3991_v17 = vpop.eup %3990  ;;  %3770 = vmatpush3.bf16.msra.mxu1 %v2241_v13  ;;  %3777 = vmatprep.mubr.msk.bf16.mxu0 %vm4080_vm2, %v4079_v10 }
 0x9dd   : > { %v2133_v18 = vmul.f32 %v3991_v17, %v3983_v49  ;;  %3871 = vmatprep.subr.msk.bf16.mxu1 %vm1143_vm4, %v887_v0 }
 0x9de   : > { %v2284_v22 = vpop.permute.xlu1 %2283  ;;  %v2498_v55 = vpop.permute.xlu0 %2497 }
 0x9df   : > { %v2289_v24 = vsel %vm1143_vm4, %v2284_v22, 0  ;;  %v2137_v29 = vpack.c.bf16 %v2133_v18, %v2133_v18  ;;  %v2503_v59 = vsel %vm896_vm3, %v2498_v55, 0  ;;  %v1885_v22 = vadd.f32 %v4509_v58, %v4531_v25 }
 0x9e0   : > { %v3993_v30 = vpop.eup %3992  ;;  %3776 = vmatpush3.bf16.msra.mxu0 %v2289_v24  ;;  %v1880_v58 = vadd.f32 %v4520_v1, %v4537_v28 }
 0x9e1   : > { %3772 = vmatmul.mubr.msk.bf16.vlgmr.msra.gmra.mxu1 %vm896_vm3, %v2137_v29  ;;  %3787 = vmatprep.subr.bf16.mxu0 %v4079_v10  ;;  %v2134_v31 = vmul.f32 %v3993_v30, %v3985_v51 }
 0x9e2   : > { %v2496_v60 = vpop.permute.xlu0 %2495  ;;  %3782 = vmatpush3.bf16.msra.mxu1 %v2340_v14  ;;  %v2448_v43 = vpop.permute.xlu1 %2447 }
 0x9e3   : > { %v2138_v33 = vpack.c.bf16 %v2134_v31, %v2134_v31  ;;  %3793 = vmatprep.subr.bf16.mxu1 %v4079_v10  ;;  %v2453_v53 = vsel %vm896_vm3, %v2448_v43, 0  ;;  %v1877_v31 = vadd.f32 %v4511_v61, %v4533_v26 }
 0x9e5   : > { %3778 = vmatmul.mubr.msk.bf16.vlgmr.msra.gmra.mxu0 %vm896_vm3, %v2138_v33 }
 0x9e6   : > { %3788 = vmatpush3.bf16.xpose.msra.mxu0 %v2403_v35  ;;  %3789 = vmatprep.mubr.msk.bf16.mxu0 %vm4080_vm2, %v4079_v10  ;;  %v2446_v49 = vpop.permute.xlu1 %2445  ;;  %v1888_v35 = vadd.f32 %v4515_v63, %v4535_v27 }
 0x9e7   : > { %3799 = vmatprep.subr.bf16.mxu0 %v4079_v10 }
 0x9ea   : > { %v2548_v57 = vpop.permute.xlu1 %2547 }
 0x9eb   : > { %v2553_v4 = vsel %vm896_vm3, %v2548_v57, 0 }
 0x9ed   : > { %3790 = vmatmul.mubr.msk.bf16.vlgmr.msra.gmra.mxu0 %vm896_vm3, %v2396_v34 }
 0x9ee   : > { %3800 = vmatpush3.bf16.xpose.msra.mxu0 %v2503_v59  ;;  %3801 = vmatprep.mubr.msk.bf16.mxu0 %vm4080_vm2, %v4079_v10  ;;  %v2546_v11 = vpop.permute.xlu1 %2545 }
 0x9ef   : > { %3811 = vmatprep.subr.bf16.mxu0 %v4079_v10 }
 0x9f5   : > { %3802 = vmatmul.mubr.msk.bf16.vlgmr.msra.gmra.mxu0 %vm896_vm3, %v2496_v60 }
 0x9f6   : > { %3813 = vmatprep.mubr.msk.bf16.mxu0 %vm4080_vm2, %v4079_v10 }
 0xa99   : > { %v2181_v15 = vpop.f32.mrf.mxu1 }
 0xa9b   : > { %v3761_v36 = vpop.f32.mrf.mxu1  ;;  %v2229_v37 = vpop.f32.mrf.mxu0 }
 0xa9c   : > { %v2331_v38 = vpack.c.bf16 %v2229_v37, %v2181_v15 }
 0xa9d   : > { %v2184_v39 = vpop.f32.mrf.mxu1  ;;  %v3767_v40 = vpop.f32.mrf.mxu0 }
 0xa9e   : > { %3783 = vmatprep.mubr.msk.bf16.mxu1 %vm896_vm3, %v2331_v38 }
 0xa9f   : > { %v3762_v41 = vpop.f32.mrf.mxu1  ;;  %v2232_v42 = vpop.f32.mrf.mxu0 }
 0xaa1   : > { %v3768_v44 = vpop.f32.mrf.mxu0  ;;  %v2277_v45 = vpop.f32.mrf.mxu1 }
 0xaa3   : > { %v3773_v46 = vpop.f32.mrf.mxu1 }
 0xaa5   : > { %v2280_v47 = vpop.f32.mrf.mxu1  ;;  %v2325_v48 = vpop.f32.mrf.mxu0 }
 0xaa6   : > { %v2332_v50 = vpack.c.bf16 %v2325_v48, %v2277_v45 }
 0xaa7   : > { %v3774_v51 = vpop.f32.mrf.mxu1  ;;  %v3779_v52 = vpop.f32.mrf.mxu0 }
 0xaa8   : > { %3784 = vmatmul.mubr.msk.bf16.vlgmr.msra.gmra.mxu1 %vm896_vm3, %v2332_v50 }
 0xaa9   : > { %3794 = vmatpush3.bf16.xpose.msra.mxu1 %v2453_v53  ;;  %v2328_v54 = vpop.f32.mrf.mxu0  ;;  %3795 = vmatprep.mubr.msk.bf16.mxu1 %vm4080_vm2, %v4079_v10 }
 0xaaa   : > { %3805 = vmatprep.subr.bf16.mxu1 %v4079_v10 }
 0xaab   : > { %v3780_v56 = vpop.f32.mrf.mxu0 }
 0xaad   : > { %v2439_v62 = vpop.f32.mrf.mxu0 }
 0xaae   : > { %v2440_v2 = vadd.f32 %v2439_v62, %v4355_v32  ;;  %v4034_v32 = vld [vmem:[%s4805_s1] sm:$0xff] }
 0xaaf   : > { %v3791_v3 = vpop.f32.mrf.mxu0 }
 0xab0   : > { %3796 = vmatmul.mubr.msk.bf16.vlgmr.msra.gmra.mxu1 %vm896_vm3, %v2446_v49  ;;  %v2595_v5 = vsel %vm896_vm3, %v2440_v2, -inf }
 0xab1   : > { %3806 = vmatpush3.bf16.xpose.msra.mxu1 %v2553_v4  ;;  %2596 = vmax.xlane.f32.xlu0 %v2595_v5  ;;  %v2442_v6 = vpop.f32.mrf.mxu0 }
 0xab2   : > { %3807 = vmatprep.mubr.msk.bf16.mxu1 %vm4080_vm2, %v4079_v10  ;;  %3817 = vmatprep.subr.bf16.mxu1 %v4079_v10 }
 0xab3   : > { %v3792_v7 = vpop.f32.mrf.mxu0 }
 0xab5   : > { %v2539_v8 = vpop.f32.mrf.mxu0 }
 0xab6   : > { %v2540_v9 = vadd.f32 %v4034_v32, %v2539_v8 }
 0xab7   : > { %v3803_v12 = vpop.f32.mrf.mxu0 }
 0xab8   : > { %3808 = vmatmul.mubr.msk.bf16.vlgmr.msra.gmra.mxu1 %vm896_vm3, %v2546_v11  ;;  %v2601_v13 = vsel %vm896_vm3, %v2540_v9, -inf }
 0xab9   : > { %2602 = vmax.xlane.f32.xlu0 %v2601_v13  ;;  %v2542_v17 = vpop.f32.mrf.mxu0  ;;  %3819 = vmatprep.mubr.msk.bf16.mxu1 %vm4080_vm2, %v4079_v10 }
 0xabb   : > { %v3804_v18 = vpop.f32.mrf.mxu0 }
 0xb3a   : > { %v2597_v19 = vpop.xlane.xlu0 %2596 }
 0xb3b   : > { %v2607_v24 = vsub.f32 %v2440_v2, %v2597_v19 }
 0xb3d   : > { %v2611_v55 = vmul.f32 1.442695, %v2607_v24 }
 0xb3f   : > { %3994 = vpow2.f32 %v2611_v55 }
 0xb42   : > { %v2603_v29 = vpop.xlane.xlu0 %2602 }
 0xb43   : > { %v2609_v59 = vsub.f32 %v2540_v9, %v2603_v29 }
 0xb45   : > { %v2615_v15 = vmul.f32 1.442695, %v2609_v59 }
 0xb47   : > { %3996 = vpow2.f32 %v2615_v15  ;;  %v888_v15 = vld [vmem:[%s4232_s30 + $0xc] sm:$0xf] }
 0xb4c   : > { %v3995_v28 = vpop.eup %3994 }
 0xb4d   : > { %v2619_v44 = vsel %vm896_vm3, %v3995_v28, 0.0 }
 0xb54   : > { %v3997_v45 = vpop.eup %3996 }
 0xb55   : > { %v2625_v46 = vsel %vm896_vm3, %v3997_v45, 0.0 }
 0xb68   : > { %v3785_v30 = vpop.f32.mrf.mxu1 }
 0xb69   : > { %v4616_v33 = vadd.f32 %v3785_v30, %v1885_v22 }
 0xb6a   : > { %v2376_v34 = vpop.f32.mrf.mxu1 }
 0xb6b   : > { %v4620_v60 = vadd.f32 %v2376_v34, %v1877_v31 }
 0xb6c   : > { %v3786_v0 = vpop.f32.mrf.mxu1 }
 0xb6d   : > { %v4624_v25 = vadd.f32 %v3786_v0, %v1888_v35 }
 0xb6e   : > { %v2379_v14 = vpop.f32.mrf.mxu1 }
 0xb6f   : > { %v4626_v61 = vadd.f32 %v2379_v14, %v1880_v58 }
 0xb70   : > { %v2489_v26 = vpop.f32.mrf.mxu1 }
 0xb71   : > { %v2490_v36 = vadd.f32 %v4034_v32, %v2489_v26  ;;  %v2844_v26 = vsel %vm1143_vm4, %v888_v15, 0 }
 0xb72   : > { %v3797_v37 = vpop.f32.mrf.mxu1 }
 0xb73   : > { %v2598_v63 = vsel %vm896_vm3, %v2490_v36, -inf }
 0xb74   : > { %2599 = vmax.xlane.f32.xlu1 %v2598_v63  ;;  %v2492_v27 = vpop.f32.mrf.mxu1 }
 0xb76   : > { %v3798_v38 = vpop.f32.mrf.mxu1 }
 0xb78   : > { %v2589_v39 = vpop.f32.mrf.mxu1 }
 0xb79   : > { %v2590_v40 = vadd.f32 %v4034_v32, %v2589_v39 }
 0xb7a   : > { %v3809_v41 = vpop.f32.mrf.mxu1 }
 0xb7b   : > { %v2604_v1 = vsel %vm896_vm3, %v2590_v40, -inf }
 0xb7c   : > { %2605 = vmax.xlane.f32.xlu0 %v2604_v1  ;;  %v2592_v42 = vpop.f32.mrf.mxu1 }
 0xb7e   : > { %v3810_v43 = vpop.f32.mrf.mxu1 }
 0xb80   : > { %2620 = vadd.xlane.f32.xlu0 %v2619_v44 }
 0xb84   : > { %2626 = vadd.xlane.f32.xlu0 %v2625_v46  ;;  %v4035_v46 = vld [vmem:[#allocation2 + $0x10] sm:$0xff] }
 0xb85   : > { %2691 = vrot.lane.b32.xlu1 %v4319_v20, %s4091_s0 }
 0xb89   : > { %2739 = vrot.lane.b32.xlu1 %v4322_v21, %s4091_s0 }
 0xb9a   : > { %2643 = vrot.lane.b32.xlu0 %v4316_v16, %s4091_s0 }
 0xbfd   : > { %v2600_v47 = vpop.xlane.xlu1 %2599 }
 0xbfe   : > { %v2608_v48 = vsub.f32 %v2490_v36, %v2600_v47 }
 0xc00   : > { %v2613_v49 = vmul.f32 1.442695, %v2608_v48  ;;  %v4036_v48 = vld [vmem:[#allocation2] sm:$0xff] }
 0xc01   : > { %v2692_v50 = vpop.permute.xlu1 %2691 }
 0xc02   : > { %3998 = vpow2.f32 %v2613_v49  ;;  %v2697_v51 = vsel %vm1143_vm4, %v2692_v50, 0 }
 0xc03   : > { %3818 = vmatpush3.bf16.msra.mxu1 %v2697_v51  ;;  %v3495_v51 = vld [vmem:[%s4806_s20] ss:$0 sm:$0xff] }
 0xc04   : > { %3829 = vmatprep.subr.bf16.mxu1 %v4079_v10 }
 0xc05   : > { %v2606_v52 = vpop.xlane.xlu0 %2605  ;;  %v2740_v6 = vpop.permute.xlu1 %2739 }
 0xc06   : > { %v2610_v53 = vsub.f32 %v2590_v40, %v2606_v52  ;;  %v2745_v32 = vsel %vm1143_vm4, %v2740_v6, 0 }
 0xc08   : > { %v2617_v54 = vmul.f32 1.442695, %v2610_v53 }
 0xc09   : > { %v2621_v20 = vpop.xlane.xlu0 %2620 }
 0xc0a   : > { %4000 = vpow2.f32 %v2617_v54 }
 0xc0b   : > { %4002 = vrcp.f32 %v2621_v20 }
 0xc0d   : > { %v2627_v21 = vpop.xlane.xlu0 %2626 }
 0xc0e   : > { %4004 = vrcp.f32 %v2627_v21  ;;  %v4038_v21 = vld [vmem:[#allocation2 + $0x8] sm:$0xff] }
 0xc0f   : > { %v3999_v56 = vpop.eup %3998 }
 0xc10   : > { %v2622_v16 = vsel %vm896_vm3, %v3999_v56, 0.0 }
 0xc11   : > { %2623 = vadd.xlane.f32.xlu1 %v2622_v16  ;;  %v2644_v57 = vpop.permute.xlu0 %2643 }
 0xc12   : > { %v2649_v62 = vsel %vm1143_vm4, %v2644_v57, 0 }
 0xc13   : > { %3812 = vmatpush3.bf16.msra.mxu0 %v2649_v62 }
 0xc14   : > { %3823 = vmatprep.subr.bf16.mxu0 %v4079_v10 }
 0xc17   : > { %v4001_v2 = vpop.eup %4000 }
 0xc18   : > { %v4003_v3 = vpop.eup %4002  ;;  %v2628_v4 = vsel %vm896_vm3, %v4001_v2, 0.0 }
 0xc19   : > { %2629 = vadd.xlane.f32.xlu1 %v2628_v4  ;;  %v2635_v5 = vmul.f32 %v4003_v3, %v3995_v28 }
 0xc1b   : > { %v2639_v7 = vpack.c.bf16 %v2635_v5, %v2635_v5  ;;  %v4005_v8 = vpop.eup %4004 }
 0xc1c   : > { %v2637_v9 = vmul.f32 %v4005_v8, %v3997_v45 }
 0xc1d   : > { %3814 = vmatmul.mubr.msk.bf16.vlgmr.msra.gmra.mxu0 %vm896_vm3, %v2639_v7 }
 0xc1e   : > { %3824 = vmatpush3.bf16.msra.mxu0 %v2745_v32  ;;  %3825 = vmatprep.mubr.msk.bf16.mxu0 %vm4080_vm2, %v4079_v10  ;;  %v2641_v11 = vpack.c.bf16 %v2637_v9, %v2637_v9 }
 0xc1f   : > { %3872 = vmatprep.subr.msk.bf16.mxu0 %vm1143_vm4, %v888_v15 }
 0xc25   : > { %3826 = vmatmul.mubr.msk.bf16.vlgmr.msra.gmra.mxu0 %vm896_vm3, %v2641_v11 }
 0xc26   : > { %3836 = vmatpush3.bf16.msra.mxu0 %v2844_v26 }
 0xc2a   : > { %2787 = vrot.lane.b32.xlu1 %v4325_v23, %s4091_s0 }
 0xc9a   : > { %v2624_v12 = vpop.xlane.xlu1 %2623 }
 0xc9b   : > { %4006 = vrcp.f32 %v2624_v12 }
 0xca2   : > { %v2630_v13 = vpop.xlane.xlu1 %2629 }
 0xca3   : > { %4008 = vrcp.f32 %v2630_v13 }
 0xca6   : > { %v2788_v19 = vpop.permute.xlu1 %2787 }
 0xca7   : > { %v2793_v24 = vsel %vm1143_vm4, %v2788_v19, 0 }
 0xca8   : > { %v4007_v17 = vpop.eup %4006 }
 0xca9   : > { %v2636_v18 = vmul.f32 %v4007_v17, %v3999_v56 }
 0xcab   : > { %v2640_v22 = vpack.c.bf16 %v2636_v18, %v2636_v18 }
 0xcad   : > { %3820 = vmatmul.mubr.msk.bf16.vlgmr.msra.gmra.mxu1 %vm896_vm3, %v2640_v22 }
 0xcae   : > { %3830 = vmatpush3.bf16.msra.mxu1 %v2793_v24  ;;  %3831 = vmatprep.mubr.msk.bf16.mxu1 %vm4080_vm2, %v4079_v10 }
 0xcb0   : > { %v4009_v29 = vpop.eup %4008 }
 0xcb1   : > { %v2638_v30 = vmul.f32 %v4009_v29, %v4001_v2 }
 0xcb3   : > { %v2642_v23 = vpack.c.bf16 %v2638_v30, %v2638_v30 }
 0xcb5   : > { %3832 = vmatmul.mubr.msk.bf16.vlgmr.msra.gmra.mxu1 %vm896_vm3, %v2642_v23 }
 0xcdd   : > { %v2685_v31 = vpop.f32.mrf.mxu0 }
 0xcdf   : > { %v3815_v34 = vpop.f32.mrf.mxu0 }
 0xce0   : > { %v3928_v34 = vld [vmem:[%s4249_s18 + $0x8] sm:$0xff]  }
 0xce1   : > { %v2688_v35 = vpop.f32.mrf.mxu0  ;;  %3841 = vmatprep.subr.bf16.mxu1 %v3928_v34 }
 0xce2   : > { %v3929_v35 = vld [vmem:[%s4249_s18] sm:$0xff]   ;;  %3842 = vmatpush3.bf16.msra.mxu1 %v3928_v34 }
 0xce3   : > { %v3816_v55 = vpop.f32.mrf.mxu0  ;;  %3843 = vmatprep.subr.bf16.mxu1 %v3929_v35 }
 0xce5   : > { %v2781_v59 = vpop.f32.mrf.mxu0 }
 0xce6   : > { %3844 = vmatpush3.bf16.msra.mxu1 %v3929_v35 }
 0xce7   : > { %v3827_v0 = vpop.f32.mrf.mxu0 }
 0xce9   : > { %v2784_v58 = vpop.f32.mrf.mxu0 }
 0xceb   : > { %v3828_v14 = vpop.f32.mrf.mxu0 }
 0xd6d   : > { %v2733_v10 = vpop.f32.mrf.mxu1 }
 0xd6e   : > { %v2835_v36 = vpack.c.bf16 %v2733_v10, %v2685_v31 }
 0xd6f   : > { %v3821_v37 = vpop.f32.mrf.mxu1 }
 0xd70   : > { %3837 = vmatprep.mubr.msk.bf16.mxu0 %vm896_vm3, %v2835_v36 }
 0xd71   : > { %v2736_v63 = vpop.f32.mrf.mxu1 }
 0xd73   : > { %v3822_v27 = vpop.f32.mrf.mxu1 }
 0xd75   : > { %v2829_v38 = vpop.f32.mrf.mxu1 }
 0xd76   : > { %v2836_v39 = vpack.c.bf16 %v2829_v38, %v2781_v59 }
 0xd77   : > { %v3833_v40 = vpop.f32.mrf.mxu1 }
 0xd78   : > { %3838 = vmatmul.mubr.msk.bf16.vlgmr.msra.gmra.mxu0 %vm896_vm3, %v2836_v39  ;;  %v3496_v40 = vld [vmem:[%s4807_s23] ss:$0 sm:$0xff] }
 0xd79   : > { %v2832_v41 = vpop.f32.mrf.mxu1 }
 0xd7b   : > { %v3834_v1 = vpop.f32.mrf.mxu1 }
 0xe38   : > { %v3839_v28 = vpop.f32.mrf.mxu0 }
 0xe39   : > { %v2897_v42 = vadd.f32 %v3839_v28, %v4616_v33 }
 0xe3a   : > { %v2880_v43 = vpop.f32.mrf.mxu0 }
 0xe3b   : > { %v2895_v44 = vadd.f32 %v2880_v43, %v4620_v60  ;;  %v2901_v47 = vadd.f32 %v4035_v46, %v2897_v42  ;;  %v4037_v60 = vld [vmem:[#allocation2 + $0x18] sm:$0xff] }
 0xe3c   : > { %v3840_v45 = vpop.f32.mrf.mxu0 }
 0xe3d   : > { %v2899_v49 = vadd.f32 %v4036_v48, %v2895_v44  ;;  %v2898_v50 = vadd.f32 %v3840_v45, %v4624_v25  ;;  %v4672_v54 = vadd.f32 %v3495_v51, %v2901_v47  ;;  %v3497_v44 = vld [vmem:[%s4808_s15] ss:$0 sm:$0xff] }
 0xe3e   : > { %v2883_v52 = vpop.f32.mrf.mxu0 }
 0xe3f   : > { %v4669_v53 = vadd.f32 %v3495_v51, %v2899_v49  ;;  %v2896_v33 = vadd.f32 %v2883_v52, %v4626_v61  ;;  %v2902_v20 = vadd.f32 %v4037_v60, %v2898_v50  ;;  %v2922_v62 = vsel %vm730_vm1, %v4672_v54, 0.0 }
 0xe41   : > { %v2900_v56 = vadd.f32 %v4038_v21, %v2896_v33  ;;  %v2916_v16 = vsel %vm730_vm1, %v4669_v53, 0.0  ;;  %v4678_v57 = vadd.f32 %v3495_v51, %v2902_v20  ;;  %v3930_v21 = vld [vmem:[%s4259_s17 + $0x38] sm:$0xff]  }
 0xe42   : > { %2917 = vadd.xlane.f32.xlu0 %v2916_v16  ;;  %3849 = vmatprep.subr.bf16.mxu0 %v3930_v21  ;;  %v3932_v16 = vld [vmem:[%s4259_s17 + $0x28] sm:$0xff]  }
 0xe43   : > { %v4676_v25 = vadd.f32 %v3495_v51, %v2900_v56  ;;  %v2925_v2 = vsel %vm730_vm1, %v4678_v57, 0.0  ;;  %3850 = vmatpush3.bf16.msra.mxu0 %v3930_v21  ;;  %v3931_v56 = vld [vmem:[%s4259_s17 + $0x30] sm:$0xff]  }
 0xe44   : > { %3851 = vmatprep.subr.bf16.mxu0 %v3931_v56 }
 0xe45   : > { %v2919_v61 = vsel %vm730_vm1, %v4676_v25, 0.0 }
 0xe46   : > { %2923 = vadd.xlane.f32.xlu0 %v2922_v62  ;;  %2920 = vadd.xlane.f32.xlu1 %v2919_v61  ;;  %v3933_v62 = vld [vmem:[%s4259_s17 + $0x20] sm:$0xff]   ;;  %v3934_v61 = vld [vmem:[%s4259_s17 + $0x18] sm:$0xff]  }
 0xe47   : > { %3852 = vmatpush3.bf16.msra.mxu0 %v3931_v56 }
 0xe48   : > { %3853 = vmatprep.subr.bf16.mxu0 %v3932_v16 }
 0xe4a   : > { %2926 = vadd.xlane.f32.xlu0 %v2925_v2  ;;  %v3935_v2 = vld [vmem:[%s4259_s17 + $0x10] sm:$0xff]  }
 0xe4b   : > { %3854 = vmatpush3.bf16.msra.mxu0 %v3932_v16 }
 0xe4c   : > { %3855 = vmatprep.subr.bf16.mxu0 %v3933_v62 }
 0xe4f   : > { %3856 = vmatpush3.bf16.msra.mxu0 %v3933_v62 }
 0xe50   : > { %3857 = vmatprep.subr.bf16.mxu0 %v3934_v61 }
 0xe53   : > { %3858 = vmatpush3.bf16.msra.mxu0 %v3934_v61 }
 0xe54   : > { %3859 = vmatprep.subr.bf16.mxu0 %v3935_v2 }
 0xe57   : > { %3860 = vmatpush3.bf16.msra.mxu0 %v3935_v2 }
 0xecb   : > { %v2918_v3 = vpop.xlane.xlu0 %2917 }
 0xecc   : > { %v2928_v4 = vmul.f32 0.03125, %v2918_v3  ;;  %v3936_v3 = vld [vmem:[%s4259_s17 + $0x8] sm:$0xff]  }
 0xecd   : > { %3861 = vmatprep.subr.bf16.mxu0 %v3936_v3 }
 0xece   : > { %v2932_v5 = vsub.f32 %v4669_v53, %v2928_v4  ;;  %3862 = vmatpush3.bf16.msra.mxu0 %v3936_v3  ;;  %v3937_v4 = vld [vmem:[%s4259_s17] sm:$0xff]  }
 0xecf   : > { %v2924_v6 = vpop.xlane.xlu0 %2923  ;;  %v2921_v7 = vpop.xlane.xlu1 %2920  ;;  %3863 = vmatprep.subr.bf16.mxu0 %v3937_v4 }
 0xed0   : > { %v2930_v8 = vmul.f32 0.03125, %v2924_v6  ;;  %v2929_v32 = vmul.f32 0.03125, %v2921_v7  ;;  %v2936_v9 = vmul.f32 %v2932_v5, %v2932_v5 }
 0xed2   : > { %v2934_v11 = vsub.f32 %v4672_v54, %v2930_v8  ;;  %v2933_v12 = vsub.f32 %v4676_v25, %v2929_v32  ;;  %v2940_v13 = vsel %vm730_vm1, %v2936_v9, 0.0  ;;  %3864 = vmatpush3.bf16.msra.mxu0 %v3937_v4 }
 0xed3   : > { %2941 = vadd.xlane.f32.xlu0 %v2940_v13  ;;  %v2927_v17 = vpop.xlane.xlu0 %2926 }
 0xed4   : > { %v2931_v18 = vmul.f32 0.03125, %v2927_v17  ;;  %v2938_v19 = vmul.f32 %v2934_v11, %v2934_v11  ;;  %v2937_v22 = vmul.f32 %v2933_v12, %v2933_v12 }
 0xed6   : > { %v2935_v24 = vsub.f32 %v4678_v57, %v2931_v18  ;;  %v2946_v29 = vsel %vm730_vm1, %v2938_v19, 0.0  ;;  %v2943_v30 = vsel %vm730_vm1, %v2937_v22, 0.0 }
 0xed7   : > { %2947 = vadd.xlane.f32.xlu0 %v2946_v29  ;;  %2944 = vadd.xlane.f32.xlu1 %v2943_v30 }
 0xed8   : > { %v2939_v23 = vmul.f32 %v2935_v24, %v2935_v24 }
 0xeda   : > { %v2949_v31 = vsel %vm730_vm1, %v2939_v23, 0.0 }
 0xedb   : > { %2950 = vadd.xlane.f32.xlu1 %v2949_v31 }
 0xf5c   : > { %v2942_v55 = vpop.xlane.xlu0 %2941 }
 0xf5d   : > { %v2952_v59 = vmul.f32 0.03125, %v2942_v55 }
 0xf5f   : > { %v2956_v0 = vadd.f32 1e-05, %v2952_v59 }
 0xf60   : > { %v2948_v58 = vpop.xlane.xlu0 %2947  ;;  %v2945_v14 = vpop.xlane.xlu1 %2944 }
 0xf61   : > { %4010 = vrsqrt.f32 %v2956_v0  ;;  %v2954_v15 = vmul.f32 0.03125, %v2948_v58  ;;  %v2953_v26 = vmul.f32 0.03125, %v2945_v14 }
 0xf63   : > { %v2958_v10 = vadd.f32 1e-05, %v2954_v15  ;;  %v2957_v36 = vadd.f32 1e-05, %v2953_v26 }
 0xf64   : > { %v2951_v37 = vpop.xlane.xlu1 %2950 }
 0xf65   : > { %4012 = vrsqrt.f32 %v2958_v10  ;;  %v2955_v63 = vmul.f32 0.03125, %v2951_v37 }
 0xf66   : > { %4014 = vrsqrt.f32 %v2957_v36 }
 0xf67   : > { %v2959_v27 = vadd.f32 1e-05, %v2955_v63 }
 0xf69   : > { %4016 = vrsqrt.f32 %v2959_v27 }
 0xf6e   : > { %v4011_v38 = vpop.eup %4010 }
 0xf6f   : > { %v2964_v39 = vmul.f32 %v4011_v38, %v2932_v5  ;;  %v3498_v5 = vld [vmem:[%s687_s27] ss:$0 sm:$0xff] }
 0xf71   : > { %v2974_v43 = vmul.f32 %v3496_v40, %v2964_v39 }
 0xf72   : > { %v4013_v41 = vpop.eup %4012 }
 0xf73   : > { %v4015_v1 = vpop.eup %4014  ;;  %v2966_v28 = vmul.f32 %v4013_v41, %v2934_v11  ;;  %v2984_v49 = vadd.f32 %v3497_v44, %v2974_v43 }
 0xf74   : > { %v2965_v42 = vmul.f32 %v4015_v1, %v2933_v12  ;;  %v3515_v1 = vld [vmem:[%s695_s2] ss:$0 sm:$0xff] }
 0xf75   : > { %v2976_v48 = vmul.f32 %v3496_v40, %v2966_v28 }
 0xf76   : > { %v4017_v45 = vpop.eup %4016  ;;  %v2975_v46 = vmul.f32 %v3496_v40, %v2965_v42 }
 0xf77   : > { %v2967_v47 = vmul.f32 %v4017_v45, %v2935_v24  ;;  %v2986_v33 = vadd.f32 %v3497_v44, %v2976_v48 }
 0xf78   : > { %v2985_v50 = vadd.f32 %v3497_v44, %v2975_v46 }
 0xf79   : > { %v2977_v51 = vmul.f32 %v3496_v40, %v2967_v47 }
 0xf7a   : > { %v2988_v52 = vpack.c.bf16 %v2985_v50, %v2984_v49 }
 0xf7b   : > { %v2987_v60 = vadd.f32 %v3497_v44, %v2977_v51 }
 0xf7c   : > { %3845 = vmatprep.mubr.msk.bf16.mxu1 %vm730_vm1, %v2988_v52 }
 0xf7d   : > { %v2989_v20 = vpack.c.bf16 %v2987_v60, %v2986_v33 }
 0xf7f   : > { %3846 = vmatmul.mubr.msk.bf16.vlgmr.msra.gmra.mxu1 %vm730_vm1, %v2989_v20 }
0x103f   : > { %v3847_v6 = vpop.f32.mrf.mxu1 }
0x1040   : > { %v3062_v7 = vadd.f32 %v3847_v6, %v3498_v5 }
0x1041   : > { %v3053_v8 = vpop.f32.mrf.mxu1 }
0x1042   : > { %v3505_v32 = vmul.f32 -1.702, %v3062_v7  ;;  %v3054_v9 = vadd.f32 %v3498_v5, %v3053_v8 }
0x1043   : > { %v3848_v11 = vpop.f32.mrf.mxu1 }
0x1044   : > { %v3080_v12 = vmul.f32 1.442695, %v3505_v32  ;;  %v3503_v13 = vmul.f32 -1.702, %v3054_v9  ;;  %v3065_v17 = vadd.f32 %v3848_v11, %v3498_v5 }
0x1045   : > { %v3056_v18 = vpop.f32.mrf.mxu1 }
0x1046   : > { %v3076_v19 = vmul.f32 1.442695, %v3503_v13  ;;  %v3506_v22 = vmul.f32 -1.702, %v3065_v17  ;;  %v3057_v24 = vadd.f32 %v3498_v5, %v3056_v18  ;;  %4018 = vpow2.f32 %v3080_v12 }
0x1048   : > { %4020 = vpow2.f32 %v3076_v19  ;;  %v3082_v29 = vmul.f32 1.442695, %v3506_v22  ;;  %v3504_v30 = vmul.f32 -1.702, %v3057_v24 }
0x104a   : > { %4022 = vpow2.f32 %v3082_v29  ;;  %v3078_v23 = vmul.f32 1.442695, %v3504_v30 }
0x104c   : > { %4024 = vpow2.f32 %v3078_v23 }
0x1053   : > { %v4019_v31 = vpop.eup %4018 }
0x1054   : > { %v3086_v59 = vadd.f32 1.0, %v4019_v31 }
0x1055   : > { %v4021_v34 = vpop.eup %4020 }
0x1056   : > { %v3084_v35 = vadd.f32 1.0, %v4021_v34 }
0x1057   : > { %v4023_v55 = vpop.eup %4022 }
0x1058   : > { %v3087_v0 = vadd.f32 1.0, %v4023_v55  ;;  %4026 = vrcp.f32 %v3084_v35 }
0x1059   : > { %v4025_v58 = vpop.eup %4024 }
0x105a   : > { %4028 = vrcp.f32 %v3087_v0  ;;  %v3085_v14 = vadd.f32 1.0, %v4025_v58 }
0x105b   : > { %4030 = vrcp.f32 %v3086_v59 }
0x105c   : > { %4032 = vrcp.f32 %v3085_v14 }
0x1065   : > { %v4027_v15 = vpop.eup %4026 }
0x1066   : > { %v3096_v63 = vmul.f32 %v4027_v15, %v3054_v9 }
0x1067   : > { %v4029_v26 = vpop.eup %4028 }
0x1068   : > { %v4031_v10 = vpop.eup %4030  ;;  %v3099_v37 = vmul.f32 %v4029_v26, %v3065_v17 }
0x1069   : > { %v4033_v36 = vpop.eup %4032  ;;  %v3098_v38 = vmul.f32 %v4031_v10, %v3062_v7 }
0x106a   : > { %v3097_v27 = vmul.f32 %v4033_v36, %v3057_v24 }
0x106b   : > { %v3101_v40 = vpack.c.bf16 %v3099_v37, %v3098_v38 }
0x106c   : > { %v3100_v39 = vpack.c.bf16 %v3097_v27, %v3096_v63 }
0x106e   : > { %3865 = vmatprep.mubr.bf16.mxu0 %v3100_v39 }
0x106f   : > { %3866 = vmatmul.mubr.bf16.vlgmr.msra.gmra.mxu0 %v3101_v40 }
0x112f   : > { %v3867_v41 = vpop.f32.mrf.mxu0 }
0x1130   : > { %v3217_v28 = vadd.f32 %v3867_v41, %v4672_v54 }
0x1131   : > { %v3200_v42 = vpop.f32.mrf.mxu0 }
0x1132   : > { %v3228_v43 = vadd.f32 %v3515_v1, %v3217_v28  ;;  %v3215_v44 = vadd.f32 %v3200_v42, %v4669_v53 }
0x1133   : > { %v3868_v45 = vpop.f32.mrf.mxu0 }
0x1134   : > { %3232 = vst.msk [vmem:[#allocation2 + $0x10] sm:$0xff] %vm730_vm1, %v3228_v43  ;;  %v3226_v46 = vadd.f32 %v3515_v1, %v3215_v44  ;;  %v3218_v47 = vadd.f32 %v3868_v45, %v4678_v57 }
0x1135   : > { %v3203_v48 = vpop.f32.mrf.mxu0 }
0x1136   : > { %3230 = vst.msk [vmem:[#allocation2] sm:$0xff] %vm730_vm1, %v3226_v46  ;;  %v3229_v49 = vadd.f32 %v3515_v1, %v3218_v47  ;;  %v3216_v50 = vadd.f32 %v3203_v48, %v4676_v25  ;;  %3237 = sbr.rel (%p3516_p8) target bundleno = 4413 (0x113d), region = 88 }
0x1138   : > { %3233 = vst.msk [vmem:[#allocation2 + $0x18] sm:$0xff] %vm730_vm1, %v3229_v49  ;;  %v3227_v51 = vadd.f32 %v3515_v1, %v3216_v50 }
0x113a   : > { %3231 = vst.msk [vmem:[#allocation2 + $0x8] sm:$0xff] %vm730_vm1, %v3227_v51 }
0x113b   : > { %3238 = vst.msk [vmem:[%s4268_s4] sm:$0xff] %vm730_vm1, %v3226_v46  ;;  %3239 = vst.msk [vmem:[%s4268_s4 + $0x8] sm:$0xff] %vm730_vm1, %v3227_v51 }
0x113c   : > { %3240 = vst.msk [vmem:[%s4268_s4 + $0x10] sm:$0xff] %vm730_vm1, %v3228_v43  ;;  %3241 = vst.msk [vmem:[%s4268_s4 + $0x18] sm:$0xff] %vm730_vm1, %v3229_v49 }
0x113d PF: > { %s4810_s2 = sld [smem:[#allocation6_spill]] }
0x113e   : > { %s4811_s18 = sld [smem:[#allocation4_spill]] }
0x113f   : > { %s4812_s19 = sld [smem:[#allocation5_spill]] }
0x1140   : > { %s4813_s20 = sld [smem:[#allocation7_spill]] }
0x1141   : > { %s4814_s21 = sld [smem:[#allocation8_spill]] }
0x1143   : > { %s25_s22 = sadd.s32 1, %s4810_s2  }
0x1144   : > { %p22_p9 = scmp.ge.s32.totalorder %s25_s22, 6  }
0x1146   :  { %24 = sbr.rel (!%p22_p9) target bundleno = 8 (0x8), region = 154 }

</bundles_post_ra>
